<compile_context>
chip_gen: v7x
topology: tpu7x:2x2x1
jax: 0.10.0
libtpu: 0.0.40
codegen_flags: <defaults>
</compile_context>

<pallas_src>
import functools

import jax
import jax.numpy as jnp
from jax.experimental import pallas as pl
from jax.experimental.pallas import tpu as pltpu

_SCALED_SILU_SCALE = 1.0 / 0.6  # ScaledSiLU


def _scaled_silu(x):
    return jax.nn.silu(x) * _SCALED_SILU_SCALE


def _node_vector_head_kernel(clo_ref, chi_ref,                 # scalar-prefetch (SMEM)
                             idx_ref, feat_ref, vstT_ref,      # edge tiles
                             w_hid_ref, w_out_ref,             # weights
                             out_ref,                          # (num_chunks, 3, chunk_w) resident
                             *, chunk_w):
    """Grid = (edge_tile,).  Output block is resident across the whole grid."""
    t = pl.program_id(0)

    @pl.when(t == 0)
    def _init():
        out_ref[...] = jnp.zeros_like(out_ref)

    cdt = feat_ref.dtype

    # ---- MLP on natural [TE, D] tiles (edges on the MXU M dimension) ----
    h = feat_ref[...]
    num_hidden = w_hid_ref.shape[0]
    for i in range(num_hidden):                                   # statically unrolled
        h = _scaled_silu(
            jnp.dot(h, w_hid_ref[i], preferred_element_type=jnp.float32)
        ).astype(cdt)
    s = jnp.dot(h, w_out_ref[...], preferred_element_type=jnp.float32)   # [TE, 1] f32
    s = s.astype(cdt)

    ids = idx_ref[...]                                            # [TE, 1] int32 (sorted)
    vst_t = vstT_ref[...]                                         # [3, TE] compute dtype
    te = ids.shape[0]
    lane_iota = jax.lax.broadcasted_iota(jnp.int32, (te, chunk_w), 1)

    # Atom-chunk window touched by this edge tile (edges are pre-sorted by atom,
    # so the window is tight; correctness does not depend on the sort).
    c_lo = clo_ref[t]
    c_hi = chi_ref[t]

    def chunk_body(c, carry):
        a0 = pl.multiple_of(c * chunk_w, 128)
        # s-scaled one-hot: onehot_s[e, a] = s[e] if ids[e] == a0 + a else 0.
        # Padded edges have V_st == 0, so they contribute nothing regardless of s.
        onehot_s = jnp.where((ids - a0) == lane_iota, s, jnp.zeros_like(s))   # [TE, CW]
        contrib = jax.lax.dot_general(
            vst_t, onehot_s, (((1,), (0,)), ((), ())),
            preferred_element_type=jnp.float32)                              # [3, CW]
        out_ref[c] += contrib                                                # f32 accumulate
        return carry

    jax.lax.fori_loop(c_lo, c_hi + 1, chunk_body, 0)


def node_vector_output_head(forces, v_st, idx_t, n_atoms, weights, *,
                            tile_e=1024, chunk_w=1024, vmem_limit_bytes=None):
    """Pallas implementation of NodeVectorOutputHead.forward (reduction='sum')."""
    # TODO(synk): 'mean'/'max' reductions of the original module are not implemented.
    E, D = forces.shape
    assert v_st.shape == (E, 3)
    assert len(weights) >= 2, "expect >= 1 hidden layer plus the final projection"
    num_hidden = len(weights) - 1
    assert weights[-1].shape[-1] == 1, "node-vector head uses num_targets == 1"

    cdt = forces.dtype
    w_hid = jnp.stack(list(weights[:-1])).astype(cdt)             # [H, D, D]
    w_out = jnp.asarray(weights[-1]).astype(cdt)                  # [D, 1]
    # TODO(synk): on v7x, mark the two weight BlockSpecs pipeline_mode=pl.Buffered(1)
    # to avoid double-buffering grid-invariant operands.

    def rup(x, m):
        return -(-x // m) * m

    # ---- edge tiling ----
    tile_e = int(min(max(int(tile_e), 128), rup(E, 128)))
    tile_e = rup(tile_e, 128)
    num_tiles = -(-E // tile_e)
    E_pad = num_tiles * tile_e
    pad = E_pad - E

    # ---- atom-window (chunk) tiling: lane-aligned, VMEM independent of n_atoms ----
    chunk_w = int(min(max(int(chunk_w), 128), rup(n_atoms, 128)))
    chunk_w = rup(chunk_w, 128)
    n_atoms_pad = rup(n_atoms, chunk_w)
    num_chunks = n_atoms_pad // chunk_w

    # ---- sort edges by target atom; fold edge padding into the sort gather ----
    order = jnp.argsort(idx_t)
    if pad:
        order = jnp.concatenate([order, jnp.broadcast_to(order[-1], (pad,))])
    feat_s = forces[order]                                        # [E_pad, D] natural layout
    vst_s = v_st[order]                                           # [E_pad, 3]
    if pad:
        vst_s = vst_s * (jnp.arange(E_pad) < E)[:, None].astype(vst_s.dtype)
    idx_s = idx_t[order].astype(jnp.int32)                        # [E_pad], non-decreasing
    vst_T = vst_s.T.astype(cdt)                                   # [3, E_pad] (tiny transpose)
    idx2d = idx_s.reshape(E_pad, 1)

    # Per-edge-tile atom-chunk bounds (scalar-prefetched into SMEM).
    idx_tiles = idx_s.reshape(num_tiles, tile_e)
    tile_lo = jnp.clip(jnp.min(idx_tiles, axis=1), 0, n_atoms - 1)
    tile_hi = jnp.clip(jnp.max(idx_tiles, axis=1), 0, n_atoms - 1)
    tile_clo = (tile_lo // chunk_w).astype(jnp.int32)
    tile_chi = (tile_hi // chunk_w).astype(jnp.int32)

    # ---- VMEM budget (generation-gated when get_tpu_info is available) ----
    itemsize = jnp.dtype(cdt).itemsize
    if vmem_limit_bytes is None:
        est = (2 * tile_e * (D * itemsize + 3 * itemsize + 4)      # double-buffered edge tiles
               + 2 * (num_hidden * D * D + D) * itemsize           # double-buffered weights
               + 2 * num_chunks * 8 * chunk_w * 4                  # resident output (sublane pad)
               + tile_e * chunk_w * (8 + itemsize)                 # iota + mask + scaled one-hot
               + 4 * tile_e * D * 4                                # MLP intermediates
               + (4 << 20))                                        # headroom
        try:
            cap = int(pltpu.get_tpu_info().vmem_capacity_bytes)
        except Exception:
            cap = 64 << 20                                         # safe on every generation
        vmem_limit_bytes = int(min(cap, max(32 << 20, est)))

    flops = (2 * E_pad * (num_hidden * D * D + D)                  # MLP
             + 2 * E_pad * chunk_w * 3 * 2                         # windowed scatter matmul (~2 chunks/tile)
             + 6 * E_pad)
    bytes_accessed = (E_pad * ((D + 3) * itemsize + 4)
                      + (num_hidden * D * D + D) * itemsize
                      + 3 * n_atoms_pad * 4)

    kernel = functools.partial(_node_vector_head_kernel, chunk_w=chunk_w)

    out3 = pl.pallas_call(
        kernel,
        out_shape=jax.ShapeDtypeStruct((num_chunks, 3, chunk_w), jnp.float32),
        grid_spec=pltpu.PrefetchScalarGridSpec(
            num_scalar_prefetch=2,
            grid=(num_tiles,),
            in_specs=[
                pl.BlockSpec((tile_e, 1), lambda e, clo, chi: (e, 0)),          # sorted idx_t
                pl.BlockSpec((tile_e, D), lambda e, clo, chi: (e, 0)),          # sorted features
                pl.BlockSpec((3, tile_e), lambda e, clo, chi: (0, e)),          # sorted V_st^T
                pl.BlockSpec((num_hidden, D, D), lambda e, clo, chi: (0, 0, 0)),  # hidden W stack
                pl.BlockSpec((D, 1), lambda e, clo, chi: (0, 0)),               # final W
            ],
            out_specs=pl.BlockSpec((num_chunks, 3, chunk_w),
                                   lambda e, clo, chi: (0, 0, 0)),
        ),
        compiler_params=pltpu.CompilerParams(
            dimension_semantics=("arbitrary",),
            vmem_limit_bytes=vmem_limit_bytes,
        ),
        cost_estimate=pl.CostEstimate(
            flops=int(flops),
            transcendentals=int(E_pad * D * num_hidden),
            bytes_accessed=int(bytes_accessed),
        ),
    )(tile_clo, tile_chi, idx2d, feat_s, vst_T, w_hid, w_out)

    # TODO(synk): v7x megacore: split edge tiles over a leading "parallel" core axis
    # with per-core partial outputs summed in the wrapper (1-TC chips skip this).
    out = jnp.transpose(out3, (1, 0, 2)).reshape(3, n_atoms_pad)[:, :n_atoms]
    return out.T.astype(cdt)                                       # [n_atoms, 3]


def _reference(forces, v_st, idx_t, n_atoms, weights):
    h = forces.astype(jnp.float32)
    for w in weights[:-1]:
        h = _scaled_silu(h @ w)
    s = h @ weights[-1]                       # [E, 1]
    ov = s * v_st                             # [E, 3]
    return jax.ops.segment_sum(ov, idx_t, num_segments=n_atoms)


if __name__ == "__main__":
    # Small, module-consistent shapes:
    #   emb_size_edge = 32, num_mlps = 5, num_targets = 1, E = 256 edges, 16 atoms
    E, D, N_ATOMS = 256, 32, 16
    NUM_MLPS, NUM_TARGETS = 5, 1

    key = jax.random.PRNGKey(0)
    k_feat, k_vst, k_idx, k_w = jax.random.split(key, 4)

    forces = jax.random.normal(k_feat, (E, D), dtype=jnp.float32)
    v_st = jax.random.normal(k_vst, (E, 3), dtype=jnp.float32)
    v_st = v_st / jnp.linalg.norm(v_st, axis=-1, keepdims=True)   # unit edge vectors
    idx_t = jax.random.randint(k_idx, (E,), 0, N_ATOMS, dtype=jnp.int32)

    # Deterministic MLP weights: dims [D]*num_mlps + [num_targets] -> num_mlps linear layers.
    dims = [D] * NUM_MLPS + [NUM_TARGETS]
    weights = []
    wkeys = jax.random.split(k_w, len(dims) - 1)
    for i, (din, dout) in enumerate(zip(dims[:-1], dims[1:])):
        scale = 1.0 / jnp.sqrt(jnp.float32(din))
        weights.append(scale * jax.random.normal(wkeys[i], (din, dout), dtype=jnp.float32))

    out = node_vector_output_head(forces, v_st, idx_t, N_ATOMS, weights)
    out = jax.block_until_ready(out)

    ref = _reference(forces, v_st, idx_t, N_ATOMS, weights)
    assert out.shape == (N_ATOMS, 3)
    assert jnp.allclose(out, ref, atol=2e-3, rtol=2e-3), (
        f"max abs err = {jnp.max(jnp.abs(out - ref))}"
    )

    print("KERNEL_OK")
</pallas_src>

<mosaic_0001>
module attributes {stable_mosaic.version = 11 : i64} {
  func.func @_node_vector_head_kernel(%arg0: i32, %arg1: memref<1xi32, #tpu.memory_space<smem>>, %arg2: memref<1xi32, #tpu.memory_space<smem>>, %arg3: memref<256x1xi32, #tpu.memory_space<vmem>>, %arg4: memref<256x32xf32, #tpu.memory_space<vmem>>, %arg5: memref<3x256xf32, #tpu.memory_space<vmem>>, %arg6: memref<4x32x32xf32, #tpu.memory_space<vmem>>, %arg7: memref<32x1xf32, #tpu.memory_space<vmem>>, %arg8: memref<1x3x128xf32, #tpu.memory_space<vmem>>) attributes {dimension_semantics = [#tpu.dimension_semantics<arbitrary>], iteration_bounds = array<i64: 1>, scalar_prefetch = 2 : i64, scratch_operands = 0 : i64, tpu.core_type = #tpu.core_type<tc>, window_params = [{transform_indices = @transform_0, window_bounds = array<i64: 256, 1>}, {transform_indices = @transform_1, window_bounds = array<i64: 256, 32>}, {transform_indices = @transform_2, window_bounds = array<i64: 3, 256>}, {pipeline_mode = #tpu.pipeline_mode<synchronous>, transform_indices = @transform_3, window_bounds = array<i64: 4, 32, 32>}, {pipeline_mode = #tpu.pipeline_mode<synchronous>, transform_indices = @transform_4, window_bounds = array<i64: 32, 1>}, {pipeline_mode = #tpu.pipeline_mode<synchronous>, transform_indices = @transform_5, window_bounds = array<i64: 1, 3, 128>}]} {
    %c0_i32 = arith.constant 0 : i32
    %0 = arith.cmpi eq, %arg0, %c0_i32 : i32
    %1 = arith.extui %0 : i1 to i32
    %c0_i32_0 = arith.constant 0 : i32
    %2 = arith.cmpi ne, %1, %c0_i32_0 : i32
    scf.if %2 {
      %cst_31 = arith.constant 0.000000e+00 : f32
      %60 = vector.broadcast %cst_31 : f32 to vector<1x3x128xf32>
      %c0_32 = arith.constant 0 : index
      %c0_33 = arith.constant 0 : index
      %c0_34 = arith.constant 0 : index
      %61 = vector.load %arg8[%c0_32, %c0_33, %c0_34] : memref<1x3x128xf32, #tpu.memory_space<vmem>>, vector<1x3x128xf32>
      tpu.vector_store %arg8[%c0_32, %c0_33, %c0_34], %60 {strides = array<i32>} : memref<1x3x128xf32, #tpu.memory_space<vmem>>, vector<1x3x128xf32>,
    } else {
    }
    %c0 = arith.constant 0 : index
    %c0_1 = arith.constant 0 : index
    %3 = vector.load %arg4[%c0, %c0_1] : memref<256x32xf32, #tpu.memory_space<vmem>>, vector<256x32xf32>
    %c0_2 = arith.constant 0 : index
    %c0_3 = arith.constant 0 : index
    %c0_4 = arith.constant 0 : index
    %4 = vector.load %arg6[%c0_2, %c0_3, %c0_4] : memref<4x32x32xf32, #tpu.memory_space<vmem>>, vector<1x32x32xf32>
    %5 = vector.shape_cast %4 : vector<1x32x32xf32> to vector<32x32xf32>
    %cst = arith.constant dense<0.000000e+00> : vector<256x32xf32>
    %6 = tpu.matmul %3, %5, %cst {dimension_numbers = #tpu.dot_dimension_numbers<[1], [0], [0], [1], [0, 0, 1, 1], [], []>} : vector<256x32xf32>, vector<32x32xf32>, vector<256x32xf32> -> vector<256x32xf32>
    %7 = arith.negf %6 : vector<256x32xf32>
    %8 = math.exp %7 : vector<256x32xf32>
    %cst_5 = arith.constant 1.000000e+00 : f32
    %9 = vector.broadcast %cst_5 : f32 to vector<256x32xf32>
    %10 = arith.addf %9, %8 : vector<256x32xf32>
    %11 = arith.divf %9, %10 : vector<256x32xf32>
    %12 = arith.mulf %6, %11 : vector<256x32xf32>
    %cst_6 = arith.constant 1.66666663 : f32
    %13 = vector.broadcast %cst_6 : f32 to vector<256x32xf32>
    %14 = arith.mulf %12, %13 : vector<256x32xf32>
    %c1 = arith.constant 1 : index
    %c0_7 = arith.constant 0 : index
    %c0_8 = arith.constant 0 : index
    %15 = vector.load %arg6[%c1, %c0_7, %c0_8] : memref<4x32x32xf32, #tpu.memory_space<vmem>>, vector<1x32x32xf32>
    %16 = vector.shape_cast %15 : vector<1x32x32xf32> to vector<32x32xf32>
    %cst_9 = arith.constant dense<0.000000e+00> : vector<256x32xf32>
    %17 = tpu.matmul %14, %16, %cst_9 {dimension_numbers = #tpu.dot_dimension_numbers<[1], [0], [0], [1], [0, 0, 1, 1], [], []>} : vector<256x32xf32>, vector<32x32xf32>, vector<256x32xf32> -> vector<256x32xf32>
    %18 = arith.negf %17 : vector<256x32xf32>
    %19 = math.exp %18 : vector<256x32xf32>
    %cst_10 = arith.constant 1.000000e+00 : f32
    %20 = vector.broadcast %cst_10 : f32 to vector<256x32xf32>
    %21 = arith.addf %20, %19 : vector<256x32xf32>
    %22 = arith.divf %20, %21 : vector<256x32xf32>
    %23 = arith.mulf %17, %22 : vector<256x32xf32>
    %cst_11 = arith.constant 1.66666663 : f32
    %24 = vector.broadcast %cst_11 : f32 to vector<256x32xf32>
    %25 = arith.mulf %23, %24 : vector<256x32xf32>
    %c2 = arith.constant 2 : index
    %c0_12 = arith.constant 0 : index
    %c0_13 = arith.constant 0 : index
    %26 = vector.load %arg6[%c2, %c0_12, %c0_13] : memref<4x32x32xf32, #tpu.memory_space<vmem>>, vector<1x32x32xf32>
    %27 = vector.shape_cast %26 : vector<1x32x32xf32> to vector<32x32xf32>
    %cst_14 = arith.constant dense<0.000000e+00> : vector<256x32xf32>
    %28 = tpu.matmul %25, %27, %cst_14 {dimension_numbers = #tpu.dot_dimension_numbers<[1], [0], [0], [1], [0, 0, 1, 1], [], []>} : vector<256x32xf32>, vector<32x32xf32>, vector<256x32xf32> -> vector<256x32xf32>
    %29 = arith.negf %28 : vector<256x32xf32>
    %30 = math.exp %29 : vector<256x32xf32>
    %cst_15 = arith.constant 1.000000e+00 : f32
    %31 = vector.broadcast %cst_15 : f32 to vector<256x32xf32>
    %32 = arith.addf %31, %30 : vector<256x32xf32>
    %33 = arith.divf %31, %32 : vector<256x32xf32>
    %34 = arith.mulf %28, %33 : vector<256x32xf32>
    %cst_16 = arith.constant 1.66666663 : f32
    %35 = vector.broadcast %cst_16 : f32 to vector<256x32xf32>
    %36 = arith.mulf %34, %35 : vector<256x32xf32>
    %c3 = arith.constant 3 : index
    %c0_17 = arith.constant 0 : index
    %c0_18 = arith.constant 0 : index
    %37 = vector.load %arg6[%c3, %c0_17, %c0_18] : memref<4x32x32xf32, #tpu.memory_space<vmem>>, vector<1x32x32xf32>
    %38 = vector.shape_cast %37 : vector<1x32x32xf32> to vector<32x32xf32>
    %cst_19 = arith.constant dense<0.000000e+00> : vector<256x32xf32>
    %39 = tpu.matmul %36, %38, %cst_19 {dimension_numbers = #tpu.dot_dimension_numbers<[1], [0], [0], [1], [0, 0, 1, 1], [], []>} : vector<256x32xf32>, vector<32x32xf32>, vector<256x32xf32> -> vector<256x32xf32>
    %40 = arith.negf %39 : vector<256x32xf32>
    %41 = math.exp %40 : vector<256x32xf32>
    %cst_20 = arith.constant 1.000000e+00 : f32
    %42 = vector.broadcast %cst_20 : f32 to vector<256x32xf32>
    %43 = arith.addf %42, %41 : vector<256x32xf32>
    %44 = arith.divf %42, %43 : vector<256x32xf32>
    %45 = arith.mulf %39, %44 : vector<256x32xf32>
    %cst_21 = arith.constant 1.66666663 : f32
    %46 = vector.broadcast %cst_21 : f32 to vector<256x32xf32>
    %47 = arith.mulf %45, %46 : vector<256x32xf32>
    %c0_22 = arith.constant 0 : index
    %c0_23 = arith.constant 0 : index
    %48 = vector.load %arg7[%c0_22, %c0_23] : memref<32x1xf32, #tpu.memory_space<vmem>>, vector<32x1xf32>
    %cst_24 = arith.constant dense<0.000000e+00> : vector<256x1xf32>
    %49 = tpu.matmul %47, %48, %cst_24 {dimension_numbers = #tpu.dot_dimension_numbers<[1], [0], [0], [1], [0, 0, 1, 1], [], []>} : vector<256x32xf32>, vector<32x1xf32>, vector<256x1xf32> -> vector<256x1xf32>
    %c0_25 = arith.constant 0 : index
    %c0_26 = arith.constant 0 : index
    %50 = vector.load %arg3[%c0_25, %c0_26] : memref<256x1xi32, #tpu.memory_space<vmem>>, vector<256x1xi32>
    %c0_27 = arith.constant 0 : index
    %c0_28 = arith.constant 0 : index
    %51 = vector.load %arg5[%c0_27, %c0_28] : memref<3x256xf32, #tpu.memory_space<vmem>>, vector<3x256xf32>
    %52 = tpu.iota {dimensions = array<i32: 1>} : vector<256x128xi32>
    %53 = arith.index_cast %arg0 : i32 to index
    %54 = memref.load %arg1[%53] : memref<1xi32, #tpu.memory_space<smem>>
    %55 = arith.index_cast %arg0 : i32 to index
    %56 = memref.load %arg2[%55] : memref<1xi32, #tpu.memory_space<smem>>
    %c1_i32 = arith.constant 1 : i32
    %57 = arith.addi %56, %c1_i32 : i32
    %c0_i32_29 = arith.constant 0 : i32
    %58 = arith.subi %57, %54 : i32
    %59 = arith.addi %54, %58 : i32
    %c1_i32_30 = arith.constant 1 : i32
    scf.for %arg9 = %54 to %59 step %c1_i32_30  : i32 {
      %c128_i32 = arith.constant 128 : i32
      %60 = arith.muli %arg9, %c128_i32 : i32
      %61 = tpu.assume_multiple %60, 128 : i32
      %62 = vector.broadcast %61 : i32 to vector<256x1xi32>
      %63 = arith.subi %50, %62 : vector<256x1xi32>
      %64 = vector.broadcast %63 : vector<256x1xi32> to vector<256x128xi32>
      %65 = arith.cmpi eq, %64, %52 : vector<256x128xi32>
      %cst_31 = arith.constant 0.000000e+00 : f32
      %66 = vector.broadcast %cst_31 : f32 to vector<256x1xf32>
      %67 = vector.shape_cast %49 : vector<256x1xf32> to vector<256x1xf32>
      %68 = vector.broadcast %67 : vector<256x1xf32> to vector<256x128xf32>
      %69 = vector.shape_cast %66 : vector<256x1xf32> to vector<256x1xf32>
      %70 = vector.broadcast %69 : vector<256x1xf32> to vector<256x128xf32>
      %71 = arith.select %65, %68, %70 : vector<256x128xi1>, vector<256x128xf32>
      %cst_32 = arith.constant dense<0.000000e+00> : vector<3x128xf32>
      %72 = tpu.matmul %51, %71, %cst_32 {dimension_numbers = #tpu.dot_dimension_numbers<[1], [0], [0], [1], [0, 0, 1, 1], [], []>} : vector<3x256xf32>, vector<256x128xf32>, vector<3x128xf32> -> vector<3x128xf32>
      %73 = arith.index_cast %arg9 : i32 to index
      %c0_33 = arith.constant 0 : index
      %c0_34 = arith.constant 0 : index
      %74 = vector.load %arg8[%73, %c0_33, %c0_34] : memref<1x3x128xf32, #tpu.memory_space<vmem>>, vector<1x3x128xf32>
      %75 = vector.shape_cast %74 : vector<1x3x128xf32> to vector<3x128xf32>
      %76 = arith.addf %75, %72 : vector<3x128xf32>
      %77 = arith.index_cast %arg9 : i32 to index
      %c0_35 = arith.constant 0 : index
      %c0_36 = arith.constant 0 : index
      %78 = vector.load %arg8[%77, %c0_35, %c0_36] : memref<1x3x128xf32, #tpu.memory_space<vmem>>, vector<1x3x128xf32>
      %79 = vector.shape_cast %78 : vector<1x3x128xf32> to vector<3x128xf32>
      %80 = vector.shape_cast %76 : vector<3x128xf32> to vector<1x3x128xf32>
      tpu.vector_store %arg8[%77, %c0_35, %c0_36], %80 {strides = array<i32>} : memref<1x3x128xf32, #tpu.memory_space<vmem>>, vector<1x3x128xf32>,
    }
    return
  }
  func.func @transform_0(%arg0: i32, %arg1: memref<1xi32, #tpu.memory_space<smem>>, %arg2: memref<1xi32, #tpu.memory_space<smem>>) -> (i32, i32) {
    %c0_i32 = arith.constant 0 : i32
    %c0_i32_0 = arith.constant 0 : i32
    return %arg0, %c0_i32 : i32, i32
  }
  func.func @transform_1(%arg0: i32, %arg1: memref<1xi32, #tpu.memory_space<smem>>, %arg2: memref<1xi32, #tpu.memory_space<smem>>) -> (i32, i32) {
    %c0_i32 = arith.constant 0 : i32
    %c0_i32_0 = arith.constant 0 : i32
    return %arg0, %c0_i32 : i32, i32
  }
  func.func @transform_2(%arg0: i32, %arg1: memref<1xi32, #tpu.memory_space<smem>>, %arg2: memref<1xi32, #tpu.memory_space<smem>>) -> (i32, i32) {
    %c0_i32 = arith.constant 0 : i32
    %c0_i32_0 = arith.constant 0 : i32
    return %c0_i32, %arg0 : i32, i32
  }
  func.func @transform_3(%arg0: i32, %arg1: memref<1xi32, #tpu.memory_space<smem>>, %arg2: memref<1xi32, #tpu.memory_space<smem>>) -> (i32, i32, i32) {
    %c0_i32 = arith.constant 0 : i32
    %c0_i32_0 = arith.constant 0 : i32
    %c0_i32_1 = arith.constant 0 : i32
    %c0_i32_2 = arith.constant 0 : i32
    return %c0_i32, %c0_i32_0, %c0_i32_1 : i32, i32, i32
  }
  func.func @transform_4(%arg0: i32, %arg1: memref<1xi32, #tpu.memory_space<smem>>, %arg2: memref<1xi32, #tpu.memory_space<smem>>) -> (i32, i32) {
    %c0_i32 = arith.constant 0 : i32
    %c0_i32_0 = arith.constant 0 : i32
    %c0_i32_1 = arith.constant 0 : i32
    return %c0_i32, %c0_i32_0 : i32, i32
  }
  func.func @transform_5(%arg0: i32, %arg1: memref<1xi32, #tpu.memory_space<smem>>, %arg2: memref<1xi32, #tpu.memory_space<smem>>) -> (i32, i32, i32) {
    %c0_i32 = arith.constant 0 : i32
    %c0_i32_0 = arith.constant 0 : i32
    %c0_i32_1 = arith.constant 0 : i32
    %c0_i32_2 = arith.constant 0 : i32
    return %c0_i32, %c0_i32_0, %c0_i32_1 : i32, i32, i32
  }
}

</mosaic_0001>

<bundles_post_ra>
// kernel: tpu_custom_call.1
= control target key start
LH: loop header
LB: loop body
LE: loop exit
PB: predicated region body
PF: predicated region fallthrough
CT: control target
= control target key end

     0   :  { %vm65_vm0 = vcmask 261120   ;;  %v4734_v0 = vmov 0.0   ;;  %s5929_s0 = inlined_call_operand.<no memory space> [shape: s32[1], index: 0, kind: input, shape index: {}]   ;;  %s5930_s5 = inlined_call_operand.vmem [shape: f32[4,32,32], index: 5, kind: input, shape index: {}]   ;;  %s5931_s7 = inlined_call_operand.vmem [shape: f32[1,3,128], index: 7, kind: output, shape index: {}]   ;;  %s5932_s3 = inlined_call_operand.vmem [shape: f32[256,32], index: 3, kind: input, shape index: {}]   ;;  %s5933_s6 = inlined_call_operand.vmem [shape: f32[32,1], index: 6, kind: input, shape index: {}]   ;;  %s5934_s1 = inlined_call_operand.<no memory space> [shape: s32[1], index: 1, kind: input, shape index: {}]   ;;  %s5935_s2 = inlined_call_operand.vmem [shape: s32[256,1], index: 2, kind: input, shape index: {}]   ;;  %s5936_s4 = inlined_call_operand.vmem [shape: f32[3,256], index: 4, kind: input, shape index: {}]  }
   0x1   :  { %28 = vst [vmem:[%s5931_s7] sm:$0x7] %v4734_v0  ;;  %v61_v1 = vld [vmem:[%s5930_s5] sm:$0xff]  ;;  %v62_v2 = vld [vmem:[%s5930_s5 + $0x8] sm:$0xff]  ;;  %v63_v3 = vld [vmem:[%s5930_s5 + $0x10] sm:$0xff]  ;;  %s2751_s19 = sadd.s32 1, %s5934_s1 }
   0x2   :  { %v4030_v4 = vpack.c.bf16 %v62_v2, %v61_v1  ;;  %v64_v5 = vld [vmem:[%s5930_s5 + $0x18] sm:$0xff]  ;;  %v29_v6 = vld [vmem:[%s5932_s3] sm:$0xff]  ;;  %v30_v9 = vld [vmem:[%s5932_s3 + $0x8] sm:$0xff]  ;;  %p3197_p0 = scmp.ge.s32.totalorder %s5929_s0, %s2751_s19 }
   0x3   :  { %v4034_v7 = vpack.c.bf16 %v64_v5, %v63_v3  ;;  %3758 = vmatprep.mubr.msk.f32.mxu0 %vm65_vm0, %v29_v6  ;;  %v45_v8 = vld [vmem:[%s5932_s3 + $0x80] sm:$0xff]  ;;  %v46_v10 = vld [vmem:[%s5932_s3 + $0x88] sm:$0xff]  ;;  %v31_v11 = vld [vmem:[%s5932_s3 + $0x10] sm:$0xff] }
   0x4   :  { %4031 = vmatprep.subr.bf16.mxu0 %v4030_v4  ;;  %4118 = vmatprep.subr.bf16.mxu1 %v4030_v4  ;;  %v47_v12 = vld [vmem:[%s5932_s3 + $0x90] sm:$0xff]  ;;  %v32_v13 = vld [vmem:[%s5932_s3 + $0x18] sm:$0xff]  ;;  %v33_v15 = vld [vmem:[%s5932_s3 + $0x20] sm:$0xff] }
   0x5   :  { %4033 = vmatpush3.bf16.msra.mxu0 %v4030_v4  ;;  %4120 = vmatpush3.bf16.msra.mxu1 %v4030_v4  ;;  %v48_v14 = vld [vmem:[%s5932_s3 + $0x98] sm:$0xff]  ;;  %v49_v16 = vld [vmem:[%s5932_s3 + $0xa0] sm:$0xff]  ;;  %v34_v17 = vld [vmem:[%s5932_s3 + $0x28] sm:$0xff] }
   0x6   :  { %4035 = vmatprep.subr.bf16.mxu0 %v4034_v7  ;;  %4119 = vmatprep.subr.bf16.mxu1 %v4034_v7  ;;  %v50_v18 = vld [vmem:[%s5932_s3 + $0xa8] sm:$0xff]  ;;  %v35_v19 = vld [vmem:[%s5932_s3 + $0x30] sm:$0xff]  ;;  %v36_v21 = vld [vmem:[%s5932_s3 + $0x38] sm:$0xff] }
   0x7   :  { %3782 = vmatprep.mubr.msk.f32.mxu1 %vm65_vm0, %v45_v8  ;;  %v51_v20 = vld [vmem:[%s5932_s3 + $0xb0] sm:$0xff]  ;;  %v52_v22 = vld [vmem:[%s5932_s3 + $0xb8] sm:$0xff]  ;;  %v37_v23 = vld [vmem:[%s5932_s3 + $0x40] sm:$0xff] }
   0x8   :  { %v53_v24 = vld [vmem:[%s5932_s3 + $0xc0] sm:$0xff]  ;;  %v38_v25 = vld [vmem:[%s5932_s3 + $0x48] sm:$0xff]  ;;  %v39_v27 = vld [vmem:[%s5932_s3 + $0x50] sm:$0xff] }
   0x9   :  { %4037 = vmatpush3.bf16.msra.mxu0 %v4034_v7  ;;  %4121 = vmatpush3.bf16.msra.mxu1 %v4034_v7  ;;  %v54_v26 = vld [vmem:[%s5932_s3 + $0xc8] sm:$0xff]  ;;  %v55_v28 = vld [vmem:[%s5932_s3 + $0xd0] sm:$0xff]  ;;  %v40_v29 = vld [vmem:[%s5932_s3 + $0x58] sm:$0xff] }
   0xa   :  { %v56_v30 = vld [vmem:[%s5932_s3 + $0xd8] sm:$0xff]  ;;  %v41_v31 = vld [vmem:[%s5932_s3 + $0x60] sm:$0xff]  ;;  %v42_v33 = vld [vmem:[%s5932_s3 + $0x68] sm:$0xff] }
   0xb   :  { %v57_v32 = vld [vmem:[%s5932_s3 + $0xe0] sm:$0xff]  ;;  %v58_v34 = vld [vmem:[%s5932_s3 + $0xe8] sm:$0xff]  ;;  %v43_v35 = vld [vmem:[%s5932_s3 + $0x70] sm:$0xff] }
   0xc   :  { %3759 = vmatmul.mubr.msk.f32.vlgmr.msra.gmra.mrb[0].mxu0 %vm65_vm0, %v30_v9  ;;  %3783 = vmatmul.mubr.msk.f32.vlgmr.msra.gmra.mrb[0].mxu1 %vm65_vm0, %v46_v10  ;;  %v59_v36 = vld [vmem:[%s5932_s3 + $0xf0] sm:$0xff]  ;;  %v44_v37 = vld [vmem:[%s5932_s3 + $0x78] sm:$0xff]  ;;  %v3265_v39 = vld [vmem:[%s5930_s5 + $0x20] sm:$0xff] }
   0xd   :  { %3761 = vmatprep.mubr.msk.f32.mxu0 %vm65_vm0, %v31_v11  ;;  %3785 = vmatprep.mubr.msk.f32.mxu1 %vm65_vm0, %v47_v12  ;;  %v60_v38 = vld [vmem:[%s5932_s3 + $0xf8] sm:$0xff]  ;;  %v3266_v40 = vld [vmem:[%s5930_s5 + $0x28] sm:$0xff]  ;;  %v3267_v42 = vld [vmem:[%s5930_s5 + $0x30] sm:$0xff] }
   0xe   :  { %v4038_v41 = vpack.c.bf16 %v3266_v40, %v3265_v39  ;;  %v3268_v43 = vld [vmem:[%s5930_s5 + $0x38] sm:$0xff] }
   0xf   :  { %v4042_v44 = vpack.c.bf16 %v3268_v43, %v3267_v42 }
  0x10   :  { %3762 = vmatmul.mubr.msk.f32.gmra.mrb[2].mxu0 %vm65_vm0, %v32_v13  ;;  %3786 = vmatmul.mubr.msk.f32.gmra.mrb[2].mxu1 %vm65_vm0, %v48_v14 }
  0x11   :  { %3764 = vmatprep.mubr.msk.f32.mxu0 %vm65_vm0, %v33_v15  ;;  %3788 = vmatprep.mubr.msk.f32.mxu1 %vm65_vm0, %v49_v16 }
  0x12   :  { %4039 = vmatprep.subr.bf16.mxu1 %v4038_v41 }
  0x13   :  { %4041 = vmatpush3.bf16.msra.mxu1 %v4038_v41 }
  0x14   :  { %3765 = vmatmul.mubr.msk.f32.gmra.mrb[4].mxu0 %vm65_vm0, %v34_v17  ;;  %3789 = vmatmul.mubr.msk.f32.gmra.mrb[4].mxu1 %vm65_vm0, %v50_v18 }
  0x15   :  { %3767 = vmatprep.mubr.msk.f32.mxu0 %vm65_vm0, %v35_v19  ;;  %3791 = vmatprep.mubr.msk.f32.mxu1 %vm65_vm0, %v51_v20 }
  0x16   :  { %4043 = vmatprep.subr.bf16.mxu1 %v4042_v44 }
  0x17   :  { %4045 = vmatpush3.bf16.msra.mxu1 %v4042_v44 }
  0x18   :  { %3768 = vmatmul.mubr.msk.f32.gmra.mrb[6].mxu0 %vm65_vm0, %v36_v21  ;;  %3792 = vmatmul.mubr.msk.f32.gmra.mrb[6].mxu1 %vm65_vm0, %v52_v22 }
  0x19   :  { %3770 = vmatprep.mubr.msk.f32.mxu0 %vm65_vm0, %v37_v23  ;;  %3794 = vmatprep.mubr.msk.f32.mxu1 %vm65_vm0, %v53_v24 }
  0x1c   :  { %3771 = vmatmul.mubr.msk.f32.gmra.mrb[8].mxu0 %vm65_vm0, %v38_v25  ;;  %3795 = vmatmul.mubr.msk.f32.gmra.mrb[8].mxu1 %vm65_vm0, %v54_v26 }
  0x1d   :  { %3773 = vmatprep.mubr.msk.f32.mxu0 %vm65_vm0, %v39_v27  ;;  %3797 = vmatprep.mubr.msk.f32.mxu1 %vm65_vm0, %v55_v28 }
  0x20   :  { %3774 = vmatmul.mubr.msk.f32.gmra.mrb[10].mxu0 %vm65_vm0, %v40_v29  ;;  %3798 = vmatmul.mubr.msk.f32.gmra.mrb[10].mxu1 %vm65_vm0, %v56_v30 }
  0x21   :  { %3776 = vmatprep.mubr.msk.f32.mxu0 %vm65_vm0, %v41_v31  ;;  %3800 = vmatprep.mubr.msk.f32.mxu1 %vm65_vm0, %v57_v32 }
  0x24   :  { %3777 = vmatmul.mubr.msk.f32.gmra.mrb[12].mxu0 %vm65_vm0, %v42_v33  ;;  %3801 = vmatmul.mubr.msk.f32.gmra.mrb[12].mxu1 %vm65_vm0, %v58_v34 }
  0x25   :  { %3779 = vmatprep.mubr.msk.f32.mxu0 %vm65_vm0, %v43_v35  ;;  %3803 = vmatprep.mubr.msk.f32.mxu1 %vm65_vm0, %v59_v36 }
  0x28   :  { %3780 = vmatmul.mubr.msk.f32.gmra.mrb[14].mxu0 %vm65_vm0, %v44_v37  ;;  %3804 = vmatmul.mubr.msk.f32.gmra.mrb[14].mxu1 %vm65_vm0, %v60_v38 }
  0xdf   :  { %v4931_v45 = vpop.f32.mrb[0].mxu0  ;;  %v4933_v46 = vpop.f32.mrb[0].mxu1 }
  0xe0   :  { %v3234_v47 = vmul.f32 -1.442695, %v4931_v45  ;;  %v4936_v48 = vpop.f32.mrb[1].mxu0  ;;  %v4938_v49 = vpop.f32.mrb[1].mxu1 }
  0xe1   :  { %v3233_v50 = vmul.f32 -1.442695, %v4936_v48 }
  0xe2   :  { %4132 = vpow2.f32 %v3234_v47 }
  0xe3   :  { %4134 = vpow2.f32 %v3233_v50  ;;  %v4941_v51 = vpop.f32.mrb[2].mxu0  ;;  %v4943_v52 = vpop.f32.mrb[2].mxu1 }
  0xe4   :  { %v3236_v53 = vmul.f32 -1.442695, %v4941_v51  ;;  %v4946_v54 = vpop.f32.mrb[3].mxu0  ;;  %v4948_v55 = vpop.f32.mrb[3].mxu1 }
  0xe5   :  { %v3235_v56 = vmul.f32 -1.442695, %v4946_v54 }
  0xe6   :  { %4136 = vpow2.f32 %v3236_v53 }
  0xe7   :  { %4138 = vpow2.f32 %v3235_v56  ;;  %v4951_v57 = vpop.f32.mrb[4].mxu0  ;;  %v4953_v58 = vpop.f32.mrb[4].mxu1 }
  0xe8   :  { %v3238_v59 = vmul.f32 -1.442695, %v4951_v57  ;;  %v4956_v60 = vpop.f32.mrb[5].mxu0  ;;  %v4958_v61 = vpop.f32.mrb[5].mxu1 }
  0xe9   :  { %v3237_v62 = vmul.f32 -1.442695, %v4956_v60 }
  0xea   :  { %4140 = vpow2.f32 %v3238_v59 }
  0xeb   :  { %4142 = vpow2.f32 %v3237_v62  ;;  %v4961_v63 = vpop.f32.mrb[6].mxu0  ;;  %v4963_v0 = vpop.f32.mrb[6].mxu1 }
  0xec   :  { %v4133_v1 = vpop.eup %4132  ;;  %v4965_v2 = vpop.f32.mrb[7].mxu0  ;;  %v3240_v7 = vmul.f32 -1.442695, %v4961_v63 }
  0xed   :  { %v4967_v3 = vpop.f32.mrb[7].mxu1  ;;  %v4135_v4 = vpop.eup %4134  ;;  %v484_v5 = vadd.f32 1.0, %v4133_v1  ;;  %v3239_v22 = vmul.f32 -1.442695, %v4965_v2 }
  0xee   :  { %v483_v6 = vadd.f32 1.0, %v4135_v4 }
  0xef   :  { %4144 = vrcp.f32 %v484_v5  ;;  %v4970_v8 = vpop.f32.mrb[8].mxu0  ;;  %v4972_v9 = vpop.f32.mrb[8].mxu1 }
  0xf0   :  { %v4137_v10 = vpop.eup %4136  ;;  %4146 = vrcp.f32 %v483_v6  ;;  %v4974_v11 = vpop.f32.mrb[9].mxu0  ;;  %v3242_v29 = vmul.f32 -1.442695, %v4970_v8 }
  0xf1   :  { %v4139_v12 = vpop.eup %4138  ;;  %v486_v13 = vadd.f32 1.0, %v4137_v10  ;;  %v4976_v14 = vpop.f32.mrb[9].mxu1  ;;  %4148 = vpow2.f32 %v3240_v7  ;;  %v3241_v33 = vmul.f32 -1.442695, %v4974_v11 }
  0xf2   :  { %v485_v15 = vadd.f32 1.0, %v4139_v12 }
  0xf3   :  { %4150 = vrcp.f32 %v486_v13  ;;  %v4978_v16 = vpop.f32.mrb[10].mxu0  ;;  %v4980_v17 = vpop.f32.mrb[10].mxu1 }
  0xf4   :  { %v4141_v18 = vpop.eup %4140  ;;  %4152 = vrcp.f32 %v485_v15  ;;  %v4982_v19 = vpop.f32.mrb[11].mxu0  ;;  %v3244_v42 = vmul.f32 -1.442695, %v4978_v16 }
  0xf5   :  { %v4143_v20 = vpop.eup %4142  ;;  %v488_v21 = vadd.f32 1.0, %v4141_v18  ;;  %v4985_v23 = vpop.f32.mrb[11].mxu1  ;;  %v3243_v47 = vmul.f32 -1.442695, %v4982_v19 }
  0xf6   :  { %v487_v24 = vadd.f32 1.0, %v4143_v20 }
  0xf7   :  { %4154 = vrcp.f32 %v488_v21  ;;  %v4987_v25 = vpop.f32.mrb[12].mxu0  ;;  %v4989_v26 = vpop.f32.mrb[12].mxu1 }
  0xf8   :  { %4156 = vrcp.f32 %v487_v24  ;;  %v4991_v27 = vpop.f32.mrb[13].mxu0  ;;  %v4994_v30 = vpop.f32.mrb[13].mxu1  ;;  %v3246_v59 = vmul.f32 -1.442695, %v4987_v25  ;;  %v3249_v24 = vmul.f32 -1.442695, %v4938_v49 }
  0xf9   :  { %v4145_v28 = vpop.eup %4144  ;;  %4158 = vpow2.f32 %v3239_v22 }
  0xfa   :  { %v4147_v31 = vpop.eup %4146  ;;  %v580_v32 = vmul.f32 %v4145_v28, %v4931_v45  ;;  %4160 = vpow2.f32 %v3242_v29 }
  0xfb   :  { %v579_v34 = vmul.f32 %v4147_v31, %v4936_v48  ;;  %v4999_v35 = vpop.f32.mrb[14].mxu0  ;;  %v5001_v36 = vpop.f32.mrb[14].mxu1  ;;  %4162 = vpow2.f32 %v3241_v33 }
  0xfc   :  { %v4149_v37 = vpop.eup %4148  ;;  %v5003_v38 = vpop.f32.mrb[15].mxu0  ;;  %v612_v44 = vmul.f32 1.6666666, %v580_v32  ;;  %4164 = vpow2.f32 %v3244_v42  ;;  %v3248_v31 = vmul.f32 -1.442695, %v4999_v35 }
  0xfd   :  { %v5005_v39 = vpop.f32.mrb[15].mxu1  ;;  %v4151_v40 = vpop.eup %4150  ;;  %v611_v41 = vmul.f32 1.6666666, %v579_v34  ;;  %v490_v50 = vadd.f32 1.0, %v4149_v37  ;;  %4166 = vpow2.f32 %v3243_v47  ;;  %v3252_v42 = vmul.f32 -1.442695, %v4943_v52 }
  0xfe   :  { %v4153_v43 = vpop.eup %4152  ;;  %v582_v45 = vmul.f32 %v4151_v40, %v4941_v51  ;;  %v3251_v40 = vmul.f32 -1.442695, %v4948_v55 }
  0xff   :  { %v581_v48 = vmul.f32 %v4153_v43, %v4946_v54  ;;  %3814 = vmatprep.mubr.msk.f32.mxu1 %vm65_vm0, %v611_v41  ;;  %4168 = vrcp.f32 %v490_v50  ;;  %v3245_v54 = vmul.f32 -1.442695, %v4991_v27 }
 0x100   :  { %3815 = vmatmul.mubr.msk.f32.vlgmr.msra.gmra.mrb[16].mxu1 %vm65_vm0, %v612_v44  ;;  %v614_v1 = vmul.f32 1.6666666, %v582_v45  ;;  %4170 = vpow2.f32 %v3246_v59  ;;  %v3247_v45 = vmul.f32 -1.442695, %v5003_v38 }
 0x101   :  { %v4155_v53 = vpop.eup %4154  ;;  %v613_v56 = vmul.f32 1.6666666, %v581_v48 }
 0x102   :  { %v4157_v62 = vpop.eup %4156  ;;  %v584_v4 = vmul.f32 %v4155_v53, %v4951_v57 }
 0x103   :  { %v4159_v51 = vpop.eup %4158  ;;  %v583_v5 = vmul.f32 %v4157_v62, %v4956_v60  ;;  %3817 = vmatprep.mubr.msk.f32.mxu1 %vm65_vm0, %v613_v56  ;;  %v3250_v60 = vmul.f32 -1.442695, %v4933_v46 }
 0x104   :  { %v489_v6 = vadd.f32 1.0, %v4159_v51  ;;  %3818 = vmatmul.mubr.msk.f32.gmra.mrb[18].mxu1 %vm65_vm0, %v614_v1  ;;  %v616_v10 = vmul.f32 1.6666666, %v584_v4  ;;  %v4161_v12 = vpop.eup %4160 }
 0x105   :  { %v615_v7 = vmul.f32 1.6666666, %v583_v5  ;;  %v4163_v57 = vpop.eup %4162  ;;  %v492_v13 = vadd.f32 1.0, %v4161_v12  ;;  %v3255_v5 = vmul.f32 -1.442695, %v4967_v3 }
 0x106   :  { %4172 = vrcp.f32 %v489_v6  ;;  %v491_v15 = vadd.f32 1.0, %v4163_v57  ;;  %v4165_v18 = vpop.eup %4164  ;;  %v3257_v57 = vmul.f32 -1.442695, %v4976_v14 }
 0x107   :  { %4174 = vpow2.f32 %v3245_v54  ;;  %3820 = vmatprep.mubr.msk.f32.mxu1 %vm65_vm0, %v615_v7  ;;  %v4167_v20 = vpop.eup %4166  ;;  %v494_v21 = vadd.f32 1.0, %v4165_v18  ;;  %v3256_v7 = vmul.f32 -1.442695, %v4963_v0 }
 0x108   :  { %3821 = vmatmul.mubr.msk.f32.gmra.mrb[20].mxu1 %vm65_vm0, %v616_v10  ;;  %4176 = vrcp.f32 %v492_v13  ;;  %v493_v28 = vadd.f32 1.0, %v4167_v20 }
 0x109   :  { %4178 = vrcp.f32 %v491_v15  ;;  %v4169_v22 = vpop.eup %4168 }
 0x10a   :  { %4180 = vpow2.f32 %v3250_v60  ;;  %v4171_v29 = vpop.eup %4170  ;;  %v586_v33 = vmul.f32 %v4169_v22, %v4961_v63  ;;  %v3253_v63 = vmul.f32 -1.442695, %v4958_v61 }
 0x10b   :  { %4182 = vrcp.f32 %v494_v21  ;;  %v496_v34 = vadd.f32 1.0, %v4171_v29  ;;  %v3258_v21 = vmul.f32 -1.442695, %v4972_v9 }
 0x10c   :  { %4184 = vrcp.f32 %v493_v28  ;;  %v618_v48 = vmul.f32 1.6666666, %v586_v33 }
 0x10d   :  { %4186 = vpow2.f32 %v3249_v24 }
 0x10e   :  { %4188 = vrcp.f32 %v496_v34 }
 0x10f   :  { %4190 = vpow2.f32 %v3248_v31  ;;  %v3259_v31 = vmul.f32 -1.442695, %v4985_v23 }
 0x110   :  { %v4173_v32 = vpop.eup %4172 }
 0x111   :  { %v4175_v37 = vpop.eup %4174  ;;  %v585_v41 = vmul.f32 %v4173_v32, %v4965_v2  ;;  %v3254_v2 = vmul.f32 -1.442695, %v4953_v58 }
 0x112   :  { %v495_v43 = vadd.f32 1.0, %v4175_v37  ;;  %v4177_v47 = vpop.eup %4176 }
 0x113   :  { %v617_v44 = vmul.f32 1.6666666, %v585_v41  ;;  %v4179_v50 = vpop.eup %4178  ;;  %v588_v53 = vmul.f32 %v4177_v47, %v4970_v8  ;;  %v3261_v41 = vmul.f32 -1.442695, %v4994_v30  ;;  %v3262_v47 = vmul.f32 -1.442695, %v4989_v26 }
 0x114   :  { %4192 = vrcp.f32 %v495_v43  ;;  %v587_v56 = vmul.f32 %v4179_v50, %v4974_v11  ;;  %v4181_v59 = vpop.eup %4180  ;;  %v3263_v50 = vmul.f32 -1.442695, %v5005_v39 }
 0x115   :  { %4194 = vpow2.f32 %v3251_v40  ;;  %3823 = vmatprep.mubr.msk.f32.mxu1 %vm65_vm0, %v617_v44  ;;  %v4183_v62 = vpop.eup %4182  ;;  %v620_v51 = vmul.f32 1.6666666, %v588_v53  ;;  %v500_v54 = vadd.f32 1.0, %v4181_v59  ;;  %v3264_v59 = vmul.f32 -1.442695, %v5001_v36 }
 0x116   :  { %4196 = vpow2.f32 %v3252_v42  ;;  %3824 = vmatmul.mubr.msk.f32.gmra.mrb[22].mxu1 %vm65_vm0, %v618_v48  ;;  %v619_v1 = vmul.f32 1.6666666, %v587_v56  ;;  %v4185_v4 = vpop.eup %4184  ;;  %v590_v8 = vmul.f32 %v4183_v62, %v4978_v16 }
 0x117   :  { %4198 = vpow2.f32 %v3247_v45  ;;  %v589_v6 = vmul.f32 %v4185_v4, %v4982_v19  ;;  %v4187_v11 = vpop.eup %4186 }
 0x118   :  { %4200 = vpow2.f32 %v3253_v63  ;;  %3826 = vmatprep.mubr.msk.f32.mxu1 %vm65_vm0, %v619_v1  ;;  %v4189_v10 = vpop.eup %4188  ;;  %v622_v60 = vmul.f32 1.6666666, %v590_v8  ;;  %v499_v16 = vadd.f32 1.0, %v4187_v11 }
 0x119   :  { %4202 = vpow2.f32 %v3254_v2  ;;  %v621_v12 = vmul.f32 1.6666666, %v589_v6  ;;  %v4191_v13 = vpop.eup %4190  ;;  %v592_v18 = vmul.f32 %v4189_v10, %v4987_v25 }
 0x11a   :  { %3827 = vmatmul.mubr.msk.f32.gmra.mrb[24].mxu1 %vm65_vm0, %v620_v51  ;;  %4204 = vpow2.f32 %v3255_v5  ;;  %v498_v19 = vadd.f32 1.0, %v4191_v13 }
 0x11b   :  { %4206 = vrcp.f32 %v500_v54  ;;  %3829 = vmatprep.mubr.msk.f32.mxu1 %vm65_vm0, %v621_v12  ;;  %v624_v32 = vmul.f32 1.6666666, %v592_v18 }
 0x11c   :  { %4208 = vpow2.f32 %v3256_v7 }
 0x11d   :  { %4210 = vpow2.f32 %v3257_v57 }
 0x11e   :  { %v4193_v15 = vpop.eup %4192  ;;  %3830 = vmatmul.mubr.msk.f32.gmra.mrb[26].mxu1 %vm65_vm0, %v622_v60  ;;  %4212 = vrcp.f32 %v498_v19 }
 0x11f   :  { %v4195_v20 = vpop.eup %4194  ;;  %v591_v22 = vmul.f32 %v4193_v15, %v4991_v27  ;;  %4214 = vrcp.f32 %v499_v16  ;;  %v3260_v27 = vmul.f32 -1.442695, %v4980_v17 }
 0x120   :  { %v4197_v24 = vpop.eup %4196  ;;  %v501_v25 = vadd.f32 1.0, %v4195_v20  ;;  %4216 = vpow2.f32 %v3258_v21 }
 0x121   :  { %v4199_v28 = vpop.eup %4198  ;;  %v623_v29 = vmul.f32 1.6666666, %v591_v22  ;;  %v502_v37 = vadd.f32 1.0, %v4197_v24 }
 0x122   :  { %v497_v33 = vadd.f32 1.0, %v4199_v28  ;;  %v4201_v34 = vpop.eup %4200 }
 0x123   :  { %3832 = vmatprep.mubr.msk.f32.mxu1 %vm65_vm0, %v623_v29  ;;  %v4203_v40 = vpop.eup %4202  ;;  %v503_v42 = vadd.f32 1.0, %v4201_v34 }
 0x124   :  { %4218 = vrcp.f32 %v497_v33  ;;  %3833 = vmatmul.mubr.msk.f32.gmra.mrb[28].mxu1 %vm65_vm0, %v624_v32  ;;  %v4205_v43 = vpop.eup %4204  ;;  %v504_v44 = vadd.f32 1.0, %v4203_v40 }
 0x125   :  { %4220 = vpow2.f32 %v3259_v31  ;;  %v4207_v45 = vpop.eup %4206  ;;  %v505_v53 = vadd.f32 1.0, %v4205_v43 }
 0x126   :  { %4222 = vrcp.f32 %v501_v25  ;;  %v4209_v48 = vpop.eup %4208  ;;  %v596_v13 = vmul.f32 %v4207_v45, %v4933_v46 }
 0x127   :  { %4224 = vrcp.f32 %v502_v37  ;;  %v4211_v63 = vpop.eup %4210  ;;  %v506_v1 = vadd.f32 1.0, %v4209_v48 }
 0x128   :  { %4226 = vpow2.f32 %v3260_v27  ;;  %v4213_v2 = vpop.eup %4212  ;;  %v507_v51 = vadd.f32 1.0, %v4211_v63  ;;  %v628_v21 = vmul.f32 1.6666666, %v596_v13 }
 0x129   :  { %4228 = vpow2.f32 %v3261_v41  ;;  %v4215_v56 = vpop.eup %4214  ;;  %v594_v5 = vmul.f32 %v4213_v2, %v4999_v35 }
 0x12a   :  { %4230 = vrcp.f32 %v503_v42  ;;  %v4217_v62 = vpop.eup %4216  ;;  %v595_v54 = vmul.f32 %v4215_v56, %v4938_v49 }
 0x12b   :  { %4232 = vrcp.f32 %v504_v44  ;;  %v508_v10 = vadd.f32 1.0, %v4217_v62  ;;  %v626_v15 = vmul.f32 1.6666666, %v594_v5 }
 0x12c   :  { %4234 = vpow2.f32 %v3262_v47  ;;  %v627_v18 = vmul.f32 1.6666666, %v595_v54 }
 0x12d   :  { %4236 = vpow2.f32 %v3263_v50 }
 0x12e   :  { %v4219_v4 = vpop.eup %4218  ;;  %4238 = vrcp.f32 %v505_v53 }
 0x12f   :  { %v4221_v8 = vpop.eup %4220  ;;  %v593_v6 = vmul.f32 %v4219_v4, %v5003_v38  ;;  %4240 = vpow2.f32 %v3264_v59 }
 0x130   :  { %v4223_v11 = vpop.eup %4222  ;;  %4242 = vrcp.f32 %v506_v1  ;;  %v509_v60 = vadd.f32 1.0, %v4221_v8 }
 0x131   :  { %v4225_v7 = vpop.eup %4224  ;;  %v625_v12 = vmul.f32 1.6666666, %v593_v6  ;;  %4244 = vrcp.f32 %v507_v51  ;;  %v597_v35 = vmul.f32 %v4223_v11, %v4948_v55  ;;  %v3336_v6 = vld [vmem:[%s5930_s5 + $0x58] sm:$0xff] }
 0x132   :  { %v4227_v57 = vpop.eup %4226  ;;  %4246 = vrcp.f32 %v508_v10  ;;  %v598_v46 = vmul.f32 %v4225_v7, %v4943_v52  ;;  %v3401_v7 = vld [vmem:[%s5930_s5 + $0x60] sm:$0xff]  ;;  %v3402_v10 = vld [vmem:[%s5930_s5 + $0x68] sm:$0xff] }
 0x133   :  { %v4229_v16 = vpop.eup %4228  ;;  %3835 = vmatprep.mubr.msk.f32.mxu1 %vm65_vm0, %v625_v12  ;;  %v510_v19 = vadd.f32 1.0, %v4227_v57  ;;  %4248 = vrcp.f32 %v509_v60  ;;  %v629_v28 = vmul.f32 1.6666666, %v597_v35  ;;  %v4054_v12 = vpack.c.bf16 %v3402_v10, %v3401_v7 }
 0x134   :  { %v4231_v49 = vpop.eup %4230  ;;  %3836 = vmatmul.mubr.msk.f32.gmra.mrb[30].mxu1 %vm65_vm0, %v626_v15  ;;  %v511_v22 = vadd.f32 1.0, %v4229_v16  ;;  %v630_v32 = vmul.f32 1.6666666, %v598_v46 }
 0x135   :  { %v4233_v38 = vpop.eup %4232  ;;  %3838 = vmatprep.mubr.msk.f32.mxu1 %vm65_vm0, %v627_v18  ;;  %v599_v55 = vmul.f32 %v4231_v49, %v4958_v61  ;;  %4250 = vrcp.f32 %v510_v19  ;;  %4055 = vmatprep.subr.bf16.mxu1 %v4054_v12 }
 0x136   :  { %v4235_v20 = vpop.eup %4234  ;;  %v600_v33 = vmul.f32 %v4233_v38, %v4953_v58  ;;  %4252 = vrcp.f32 %v511_v22  ;;  %4057 = vmatpush3.bf16.msra.mxu1 %v4054_v12 }
 0x137   :  { %v4237_v24 = vpop.eup %4236  ;;  %v512_v31 = vadd.f32 1.0, %v4235_v20  ;;  %v631_v37 = vmul.f32 1.6666666, %v599_v55 }
 0x138   :  { %v4239_v29 = vpop.eup %4238  ;;  %3839 = vmatmul.mubr.msk.f32.gmra.mrb[32].mxu1 %vm65_vm0, %v628_v21  ;;  %v513_v34 = vadd.f32 1.0, %v4237_v24  ;;  %v632_v41 = vmul.f32 1.6666666, %v600_v33 }
 0x139   :  { %3841 = vmatprep.mubr.msk.f32.mxu1 %vm65_vm0, %v629_v28  ;;  %v4241_v25 = vpop.eup %4240  ;;  %v601_v40 = vmul.f32 %v4239_v29, %v4967_v3  ;;  %4254 = vrcp.f32 %v512_v31 }
 0x13a   :  { %v4243_v52 = vpop.eup %4242  ;;  %v514_v61 = vadd.f32 1.0, %v4241_v25  ;;  %4256 = vrcp.f32 %v513_v34 }
 0x13b   :  { %v4245_v27 = vpop.eup %4244  ;;  %v602_v42 = vmul.f32 %v4243_v52, %v4963_v0  ;;  %v633_v44 = vmul.f32 1.6666666, %v601_v40 }
 0x13c   :  { %3842 = vmatmul.mubr.msk.f32.gmra.mrb[34].mxu1 %vm65_vm0, %v630_v32  ;;  %v4247_v43 = vpop.eup %4246  ;;  %v603_v58 = vmul.f32 %v4245_v27, %v4976_v14  ;;  %4258 = vrcp.f32 %v514_v61 }
 0x13d   :  { %3844 = vmatprep.mubr.msk.f32.mxu1 %vm65_vm0, %v631_v37  ;;  %v4249_v45 = vpop.eup %4248  ;;  %v634_v3 = vmul.f32 1.6666666, %v602_v42  ;;  %v604_v47 = vmul.f32 %v4247_v43, %v4972_v9 }
 0x13e   :  { %v635_v50 = vmul.f32 1.6666666, %v603_v58  ;;  %v605_v63 = vmul.f32 %v4249_v45, %v4985_v23 }
 0x13f   :  { %v4251_v48 = vpop.eup %4250  ;;  %v636_v0 = vmul.f32 1.6666666, %v604_v47 }
 0x140   :  { %3845 = vmatmul.mubr.msk.f32.gmra.mrb[36].mxu1 %vm65_vm0, %v632_v41  ;;  %v4253_v53 = vpop.eup %4252  ;;  %v606_v14 = vmul.f32 %v4251_v48, %v4980_v17  ;;  %v637_v56 = vmul.f32 1.6666666, %v605_v63 }
 0x141   :  { %3847 = vmatprep.mubr.msk.f32.mxu1 %vm65_vm0, %v633_v44  ;;  %v607_v59 = vmul.f32 %v4253_v53, %v4994_v30 }
 0x142   :  { %v638_v9 = vmul.f32 1.6666666, %v606_v14 }
 0x143   :  { %v4255_v2 = vpop.eup %4254  ;;  %v639_v4 = vmul.f32 1.6666666, %v607_v59 }
 0x144   :  { %3848 = vmatmul.mubr.msk.f32.gmra.mrb[38].mxu1 %vm65_vm0, %v634_v3  ;;  %v4257_v62 = vpop.eup %4256  ;;  %v608_v23 = vmul.f32 %v4255_v2, %v4989_v26  ;;  %v3333_v26 = vld [vmem:[%s5930_s5 + $0x40] sm:$0xff] }
 0x145   :  { %3850 = vmatprep.mubr.msk.f32.mxu1 %vm65_vm0, %v635_v50  ;;  %v609_v51 = vmul.f32 %v4257_v62, %v5005_v39  ;;  %v3334_v39 = vld [vmem:[%s5930_s5 + $0x48] sm:$0xff] }
 0x146   :  { %v4259_v1 = vpop.eup %4258  ;;  %v640_v17 = vmul.f32 1.6666666, %v608_v23  ;;  %v4046_v54 = vpack.c.bf16 %v3334_v39, %v3333_v26 }
 0x147   :  { %v610_v5 = vmul.f32 %v4259_v1, %v5001_v36  ;;  %v641_v30 = vmul.f32 1.6666666, %v609_v51  ;;  %v3335_v36 = vld [vmem:[%s5930_s5 + $0x50] sm:$0xff] }
 0x148   :  { %3851 = vmatmul.mubr.msk.f32.gmra.mrb[40].mxu1 %vm65_vm0, %v636_v0  ;;  %4047 = vmatprep.subr.bf16.mxu0 %v4046_v54  ;;  %v4050_v11 = vpack.c.bf16 %v3336_v6, %v3335_v36 }
 0x149   :  { %3853 = vmatprep.mubr.msk.f32.mxu1 %vm65_vm0, %v637_v56  ;;  %v642_v8 = vmul.f32 1.6666666, %v610_v5  ;;  %4049 = vmatpush3.bf16.msra.mxu0 %v4046_v54 }
 0x14a   :  { %4051 = vmatprep.subr.bf16.mxu0 %v4050_v11 }
 0x14c   :  { %3854 = vmatmul.mubr.msk.f32.gmra.mrb[42].mxu1 %vm65_vm0, %v638_v9 }
 0x14d   :  { %3856 = vmatprep.mubr.msk.f32.mxu1 %vm65_vm0, %v639_v4  ;;  %4053 = vmatpush3.bf16.msra.mxu0 %v4050_v11 }
 0x150   :  { %3857 = vmatmul.mubr.msk.f32.gmra.mrb[44].mxu1 %vm65_vm0, %v640_v17 }
 0x151   :  { %3859 = vmatprep.mubr.msk.f32.mxu1 %vm65_vm0, %v641_v30 }
 0x154   :  { %3860 = vmatmul.mubr.msk.f32.gmra.mrb[46].mxu1 %vm65_vm0, %v642_v8 }
 0x1d3   :  { %v3816_v57 = vpop.f32.mrb[16].mxu1 }
 0x1d4   :  { %v3302_v13 = vmul.f32 -1.442695, %v3816_v57  ;;  %v810_v60 = vpop.f32.mrb[17].mxu1 }
 0x1d5   :  { %v3301_v15 = vmul.f32 -1.442695, %v810_v60 }
 0x1d6   :  { %4260 = vpow2.f32 %v3302_v13 }
 0x1d7   :  { %4262 = vpow2.f32 %v3301_v15  ;;  %v3819_v16 = vpop.f32.mrb[18].mxu1 }
 0x1d8   :  { %v3304_v18 = vmul.f32 -1.442695, %v3819_v16  ;;  %v820_v35 = vpop.f32.mrb[19].mxu1 }
 0x1d9   :  { %v3303_v49 = vmul.f32 -1.442695, %v820_v35 }
 0x1da   :  { %4264 = vpow2.f32 %v3304_v18 }
 0x1db   :  { %4266 = vpow2.f32 %v3303_v49  ;;  %v3822_v38 = vpop.f32.mrb[20].mxu1 }
 0x1dc   :  { %v3306_v19 = vmul.f32 -1.442695, %v3822_v38  ;;  %v830_v20 = vpop.f32.mrb[21].mxu1 }
 0x1dd   :  { %v3305_v21 = vmul.f32 -1.442695, %v830_v20 }
 0x1de   :  { %4268 = vpow2.f32 %v3306_v19 }
 0x1df   :  { %4270 = vpow2.f32 %v3305_v21 }
 0x1e0   :  { %v4261_v46 = vpop.eup %4260 }
 0x1e1   :  { %v4263_v22 = vpop.eup %4262  ;;  %v1066_v24 = vadd.f32 1.0, %v4261_v46 }
 0x1e2   :  { %v1065_v28 = vadd.f32 1.0, %v4263_v22 }
 0x1e3   :  { %4272 = vrcp.f32 %v1066_v24 }
 0x1e4   :  { %v4265_v55 = vpop.eup %4264  ;;  %4274 = vrcp.f32 %v1065_v28 }
 0x1e5   :  { %v4267_v29 = vpop.eup %4266  ;;  %v1068_v31 = vadd.f32 1.0, %v4265_v55 }
 0x1e6   :  { %v1067_v25 = vadd.f32 1.0, %v4267_v29 }
 0x1e7   :  { %4276 = vrcp.f32 %v1068_v31 }
 0x1e8   :  { %v4269_v32 = vpop.eup %4268  ;;  %4278 = vrcp.f32 %v1067_v25 }
 0x1e9   :  { %v4271_v33 = vpop.eup %4270  ;;  %v1070_v34 = vadd.f32 1.0, %v4269_v32  ;;  %v5109_v52 = vpop.f32.mrb[22].mxu1 }
 0x1ea   :  { %v1069_v37 = vadd.f32 1.0, %v4271_v33  ;;  %v3308_v40 = vmul.f32 -1.442695, %v5109_v52  ;;  %v5112_v27 = vpop.f32.mrb[23].mxu1 }
 0x1eb   :  { %4280 = vrcp.f32 %v1070_v34  ;;  %v3307_v61 = vmul.f32 -1.442695, %v5112_v27 }
 0x1ec   :  { %4282 = vrcp.f32 %v1069_v37 }
 0x1ed   :  { %v4273_v41 = vpop.eup %4272  ;;  %4284 = vpow2.f32 %v3308_v40  ;;  %v5115_v44 = vpop.f32.mrb[24].mxu1 }
 0x1ee   :  { %v4275_v42 = vpop.eup %4274  ;;  %v1162_v43 = vmul.f32 %v4273_v41, %v3816_v57  ;;  %4286 = vpow2.f32 %v3307_v61  ;;  %v3310_v45 = vmul.f32 -1.442695, %v5115_v44  ;;  %v5118_v3 = vpop.f32.mrb[25].mxu1 }
 0x1ef   :  { %v1161_v58 = vmul.f32 %v4275_v42, %v810_v60  ;;  %v3309_v47 = vmul.f32 -1.442695, %v5118_v3 }
 0x1f0   :  { %4288 = vpow2.f32 %v3310_v45  ;;  %v1194_v53 = vmul.f32 1.6666666, %v1162_v43 }
 0x1f1   :  { %v4277_v48 = vpop.eup %4276  ;;  %v1193_v50 = vmul.f32 1.6666666, %v1161_v58  ;;  %4290 = vpow2.f32 %v3309_v47  ;;  %v5121_v14 = vpop.f32.mrb[26].mxu1 }
 0x1f2   :  { %v4279_v63 = vpop.eup %4278  ;;  %v1164_v0 = vmul.f32 %v4277_v48, %v3819_v16  ;;  %v3312_v56 = vmul.f32 -1.442695, %v5121_v14  ;;  %v5124_v59 = vpop.f32.mrb[27].mxu1 }
 0x1f3   :  { %v1163_v2 = vmul.f32 %v4279_v63, %v820_v35  ;;  %3870 = vmatprep.mubr.msk.f32.mxu0 %vm65_vm0, %v1193_v50  ;;  %v3311_v62 = vmul.f32 -1.442695, %v5124_v59 }
 0x1f4   :  { %3871 = vmatmul.mubr.msk.f32.vlgmr.msra.gmra.mrb[16].mxu0 %vm65_vm0, %v1194_v53  ;;  %4292 = vpow2.f32 %v3312_v56  ;;  %v1196_v4 = vmul.f32 1.6666666, %v1164_v0 }
 0x1f5   :  { %v4281_v9 = vpop.eup %4280  ;;  %v1195_v23 = vmul.f32 1.6666666, %v1163_v2  ;;  %4294 = vpow2.f32 %v3311_v62 }
 0x1f6   :  { %v4283_v1 = vpop.eup %4282  ;;  %v1166_v51 = vmul.f32 %v4281_v9, %v3822_v38 }
 0x1f7   :  { %v4285_v17 = vpop.eup %4284  ;;  %v1165_v5 = vmul.f32 %v4283_v1, %v830_v20  ;;  %v5129_v30 = vpop.f32.mrb[28].mxu1  ;;  %3873 = vmatprep.mubr.msk.f32.mxu0 %vm65_vm0, %v1195_v23 }
 0x1f8   :  { %v4287_v8 = vpop.eup %4286  ;;  %v1072_v26 = vadd.f32 1.0, %v4285_v17  ;;  %v3314_v39 = vmul.f32 -1.442695, %v5129_v30  ;;  %v5133_v54 = vpop.f32.mrb[29].mxu1  ;;  %3874 = vmatmul.mubr.msk.f32.gmra.mrb[18].mxu0 %vm65_vm0, %v1196_v4  ;;  %v1198_v7 = vmul.f32 1.6666666, %v1166_v51 }
 0x1f9   :  { %v1197_v36 = vmul.f32 1.6666666, %v1165_v5  ;;  %v1071_v6 = vadd.f32 1.0, %v4287_v8  ;;  %v3313_v11 = vmul.f32 -1.442695, %v5133_v54 }
 0x1fa   :  { %4296 = vrcp.f32 %v1072_v26  ;;  %v4289_v10 = vpop.eup %4288 }
 0x1fb   :  { %4298 = vrcp.f32 %v1071_v6  ;;  %3876 = vmatprep.mubr.msk.f32.mxu0 %vm65_vm0, %v1197_v36  ;;  %v4291_v12 = vpop.eup %4290  ;;  %v1074_v57 = vadd.f32 1.0, %v4289_v10 }
 0x1fc   :  { %4300 = vpow2.f32 %v3314_v39  ;;  %3877 = vmatmul.mubr.msk.f32.gmra.mrb[20].mxu0 %vm65_vm0, %v1198_v7  ;;  %v1073_v13 = vadd.f32 1.0, %v4291_v12 }
 0x1fd   :  { %4302 = vpow2.f32 %v3313_v11 }
 0x1fe   :  { %4304 = vrcp.f32 %v1074_v57  ;;  %v4293_v60 = vpop.eup %4292 }
 0x1ff   :  { %4306 = vrcp.f32 %v1073_v13  ;;  %v4295_v15 = vpop.eup %4294  ;;  %v1076_v16 = vadd.f32 1.0, %v4293_v60 }
 0x200   :  { %v1075_v18 = vadd.f32 1.0, %v4295_v15 }
 0x201   :  { %4308 = vrcp.f32 %v1076_v16 }
 0x202   :  { %4310 = vrcp.f32 %v1075_v18 }
 0x204   :  { %v4297_v35 = vpop.eup %4296 }
 0x205   :  { %v4299_v49 = vpop.eup %4298  ;;  %v1168_v38 = vmul.f32 %v4297_v35, %v5109_v52 }
 0x206   :  { %v4301_v19 = vpop.eup %4300  ;;  %v1167_v20 = vmul.f32 %v4299_v49, %v5112_v27 }
 0x207   :  { %v4303_v21 = vpop.eup %4302  ;;  %v1078_v46 = vadd.f32 1.0, %v4301_v19  ;;  %v5141_v22 = vpop.f32.mrb[30].mxu1  ;;  %v1200_v32 = vmul.f32 1.6666666, %v1168_v38 }
 0x208   :  { %v4305_v24 = vpop.eup %4304  ;;  %v1199_v28 = vmul.f32 1.6666666, %v1167_v20  ;;  %v1077_v55 = vadd.f32 1.0, %v4303_v21  ;;  %v3316_v29 = vmul.f32 -1.442695, %v5141_v22  ;;  %v5144_v31 = vpop.f32.mrb[31].mxu1 }
 0x209   :  { %v4307_v25 = vpop.eup %4306  ;;  %v1170_v33 = vmul.f32 %v4305_v24, %v5115_v44  ;;  %4312 = vrcp.f32 %v1078_v46  ;;  %v3315_v34 = vmul.f32 -1.442695, %v5144_v31 }
 0x20a   :  { %v1169_v52 = vmul.f32 %v4307_v25, %v5118_v3  ;;  %4314 = vrcp.f32 %v1077_v55  ;;  %3879 = vmatprep.mubr.msk.f32.mxu0 %vm65_vm0, %v1199_v28 }
 0x20b   :  { %4316 = vpow2.f32 %v3316_v29  ;;  %v5150_v37 = vpop.f32.mrb[32].mxu1  ;;  %3880 = vmatmul.mubr.msk.f32.gmra.mrb[22].mxu0 %vm65_vm0, %v1200_v32  ;;  %v4309_v40 = vpop.eup %4308  ;;  %v1202_v43 = vmul.f32 1.6666666, %v1170_v33 }
 0x20c   :  { %v1201_v27 = vmul.f32 1.6666666, %v1169_v52  ;;  %4318 = vpow2.f32 %v3315_v34  ;;  %v3318_v61 = vmul.f32 -1.442695, %v5150_v37  ;;  %v5154_v41 = vpop.f32.mrb[33].mxu1  ;;  %v4311_v42 = vpop.eup %4310  ;;  %v1172_v44 = vmul.f32 %v4309_v40, %v5121_v14 }
 0x20d   :  { %v3317_v58 = vmul.f32 -1.442695, %v5154_v41  ;;  %v1171_v45 = vmul.f32 %v4311_v42, %v5124_v59 }
 0x20e   :  { %4320 = vpow2.f32 %v3318_v61  ;;  %3882 = vmatprep.mubr.msk.f32.mxu0 %vm65_vm0, %v1201_v27  ;;  %v1204_v63 = vmul.f32 1.6666666, %v1172_v44 }
 0x20f   :  { %4322 = vpow2.f32 %v3317_v58  ;;  %v5160_v3 = vpop.f32.mrb[34].mxu1  ;;  %3883 = vmatmul.mubr.msk.f32.gmra.mrb[24].mxu0 %vm65_vm0, %v1202_v43  ;;  %v1203_v47 = vmul.f32 1.6666666, %v1171_v45 }
 0x210   :  { %v3320_v48 = vmul.f32 -1.442695, %v5160_v3  ;;  %v5164_v50 = vpop.f32.mrb[35].mxu1 }
 0x211   :  { %v3319_v53 = vmul.f32 -1.442695, %v5164_v50  ;;  %3885 = vmatprep.mubr.msk.f32.mxu0 %vm65_vm0, %v1203_v47 }
 0x212   :  { %4324 = vpow2.f32 %v3320_v48 }
 0x213   :  { %v4313_v0 = vpop.eup %4312  ;;  %4326 = vpow2.f32 %v3319_v53  ;;  %v5168_v14 = vpop.f32.mrb[36].mxu1  ;;  %3886 = vmatmul.mubr.msk.f32.gmra.mrb[26].mxu0 %vm65_vm0, %v1204_v63 }
 0x214   :  { %v4315_v2 = vpop.eup %4314  ;;  %v1174_v56 = vmul.f32 %v4313_v0, %v5129_v30  ;;  %v3322_v59 = vmul.f32 -1.442695, %v5168_v14  ;;  %v5173_v62 = vpop.f32.mrb[37].mxu1 }
 0x215   :  { %v4317_v9 = vpop.eup %4316  ;;  %v1173_v23 = vmul.f32 %v4315_v2, %v5133_v54  ;;  %v3321_v1 = vmul.f32 -1.442695, %v5173_v62 }
 0x216   :  { %v4319_v4 = vpop.eup %4318  ;;  %v1080_v51 = vadd.f32 1.0, %v4317_v9  ;;  %4328 = vpow2.f32 %v3322_v59  ;;  %v1206_v39 = vmul.f32 1.6666666, %v1174_v56 }
 0x217   :  { %v1205_v17 = vmul.f32 1.6666666, %v1173_v23  ;;  %v1079_v5 = vadd.f32 1.0, %v4319_v4  ;;  %4330 = vpow2.f32 %v3321_v1  ;;  %v5177_v8 = vpop.f32.mrb[38].mxu1 }
 0x218   :  { %v4321_v26 = vpop.eup %4320  ;;  %4332 = vrcp.f32 %v1080_v51  ;;  %v3324_v30 = vmul.f32 -1.442695, %v5177_v8  ;;  %v5180_v36 = vpop.f32.mrb[39].mxu1 }
 0x219   :  { %v4323_v6 = vpop.eup %4322  ;;  %4334 = vrcp.f32 %v1079_v5  ;;  %v1082_v54 = vadd.f32 1.0, %v4321_v26  ;;  %v3323_v11 = vmul.f32 -1.442695, %v5180_v36  ;;  %3888 = vmatprep.mubr.msk.f32.mxu0 %vm65_vm0, %v1205_v17 }
 0x21a   :  { %v1081_v7 = vadd.f32 1.0, %v4323_v6  ;;  %4336 = vpow2.f32 %v3324_v30  ;;  %3889 = vmatmul.mubr.msk.f32.gmra.mrb[28].mxu0 %vm65_vm0, %v1206_v39 }
 0x21b   :  { %4338 = vrcp.f32 %v1082_v54  ;;  %v5185_v10 = vpop.f32.mrb[40].mxu1 }
 0x21c   :  { %v4325_v12 = vpop.eup %4324  ;;  %4340 = vrcp.f32 %v1081_v7  ;;  %v3326_v57 = vmul.f32 -1.442695, %v5185_v10  ;;  %v5188_v13 = vpop.f32.mrb[41].mxu1 }
 0x21d   :  { %v4327_v60 = vpop.eup %4326  ;;  %v1084_v15 = vadd.f32 1.0, %v4325_v12  ;;  %4342 = vpow2.f32 %v3323_v11  ;;  %v3325_v16 = vmul.f32 -1.442695, %v5188_v13 }
 0x21e   :  { %v1083_v18 = vadd.f32 1.0, %v4327_v60  ;;  %4344 = vpow2.f32 %v3326_v57 }
 0x21f   :  { %4346 = vrcp.f32 %v1084_v15  ;;  %v5191_v35 = vpop.f32.mrb[42].mxu1 }
 0x220   :  { %v4329_v49 = vpop.eup %4328  ;;  %4348 = vrcp.f32 %v1083_v18  ;;  %v3328_v38 = vmul.f32 -1.442695, %v5191_v35  ;;  %v5194_v19 = vpop.f32.mrb[43].mxu1 }
 0x221   :  { %v4331_v20 = vpop.eup %4330  ;;  %v1086_v21 = vadd.f32 1.0, %v4329_v49  ;;  %4350 = vpow2.f32 %v3325_v16  ;;  %v3327_v46 = vmul.f32 -1.442695, %v5194_v19 }
 0x222   :  { %v4333_v24 = vpop.eup %4332  ;;  %v1085_v28 = vadd.f32 1.0, %v4331_v20  ;;  %4352 = vpow2.f32 %v3328_v38 }
 0x223   :  { %v4335_v55 = vpop.eup %4334  ;;  %v1176_v29 = vmul.f32 %v4333_v24, %v5141_v22  ;;  %4354 = vrcp.f32 %v1086_v21  ;;  %v5198_v25 = vpop.f32.mrb[44].mxu1 }
 0x224   :  { %v4337_v32 = vpop.eup %4336  ;;  %v1175_v33 = vmul.f32 %v4335_v55, %v5144_v31  ;;  %4356 = vrcp.f32 %v1085_v28  ;;  %v3330_v34 = vmul.f32 -1.442695, %v5198_v25  ;;  %v5202_v52 = vpop.f32.mrb[45].mxu1 }
 0x225   :  { %v4339_v40 = vpop.eup %4338  ;;  %v1088_v27 = vadd.f32 1.0, %v4337_v32  ;;  %4358 = vpow2.f32 %v3327_v46  ;;  %v3329_v61 = vmul.f32 -1.442695, %v5202_v52  ;;  %v1208_v44 = vmul.f32 1.6666666, %v1176_v29 }
 0x226   :  { %v4341_v42 = vpop.eup %4340  ;;  %v1207_v43 = vmul.f32 1.6666666, %v1175_v33  ;;  %4360 = vpow2.f32 %v3330_v34  ;;  %v1178_v58 = vmul.f32 %v4339_v40, %v5150_v37 }
 0x227   :  { %v4343_v22 = vpop.eup %4342  ;;  %v1177_v45 = vmul.f32 %v4341_v42, %v5154_v41  ;;  %4362 = vrcp.f32 %v1088_v27  ;;  %v5207_v31 = vpop.f32.mrb[46].mxu1 }
 0x228   :  { %v4345_v47 = vpop.eup %4344  ;;  %v1087_v48 = vadd.f32 1.0, %v4343_v22  ;;  %4364 = vpow2.f32 %v3329_v61  ;;  %v3332_v63 = vmul.f32 -1.442695, %v5207_v31  ;;  %3891 = vmatprep.mubr.msk.f32.mxu0 %vm65_vm0, %v1207_v43  ;;  %v5211_v53 = vpop.f32.mrb[47].mxu1  ;;  %v1210_v9 = vmul.f32 1.6666666, %v1178_v58 }
 0x229   :  { %v4347_v0 = vpop.eup %4346  ;;  %v1209_v2 = vmul.f32 1.6666666, %v1177_v45  ;;  %v1090_v56 = vadd.f32 1.0, %v4345_v47  ;;  %v3331_v59 = vmul.f32 -1.442695, %v5211_v53  ;;  %3892 = vmatmul.mubr.msk.f32.gmra.mrb[30].mxu0 %vm65_vm0, %v1208_v44 }
 0x22a   :  { %v4349_v37 = vpop.eup %4348  ;;  %4366 = vrcp.f32 %v1087_v48  ;;  %v1180_v23 = vmul.f32 %v4347_v0, %v5160_v3  ;;  %v2390_v0 = vld [vmem:[%s5933_s6 + $0x8] sm:$0xff] }
 0x22b   :  { %v4351_v41 = vpop.eup %4350  ;;  %v1179_v1 = vmul.f32 %v4349_v37, %v5164_v50  ;;  %4368 = vrcp.f32 %v1090_v56  ;;  %3894 = vmatprep.mubr.msk.f32.mxu0 %vm65_vm0, %v1209_v2 }
 0x22c   :  { %v4353_v4 = vpop.eup %4352  ;;  %v1089_v51 = vadd.f32 1.0, %v4351_v41  ;;  %4370 = vpow2.f32 %v3332_v63  ;;  %v1212_v6 = vmul.f32 1.6666666, %v1180_v23 }
 0x22d   :  { %v4355_v17 = vpop.eup %4354  ;;  %v1211_v5 = vmul.f32 1.6666666, %v1179_v1  ;;  %v1092_v26 = vadd.f32 1.0, %v4353_v4  ;;  %4372 = vpow2.f32 %v3331_v59  ;;  %3895 = vmatmul.mubr.msk.f32.gmra.mrb[32].mxu0 %vm65_vm0, %v1210_v9 }
 0x22e   :  { %v4357_v39 = vpop.eup %4356  ;;  %4374 = vrcp.f32 %v1089_v51  ;;  %v1182_v3 = vmul.f32 %v4355_v17, %v5168_v14 }
 0x22f   :  { %v4359_v30 = vpop.eup %4358  ;;  %v1181_v50 = vmul.f32 %v4357_v39, %v5173_v62  ;;  %4376 = vrcp.f32 %v1092_v26  ;;  %3897 = vmatprep.mubr.msk.f32.mxu0 %vm65_vm0, %v1211_v5 }
 0x230   :  { %v4361_v54 = vpop.eup %4360  ;;  %v1091_v11 = vadd.f32 1.0, %v4359_v30  ;;  %v1214_v15 = vmul.f32 1.6666666, %v1182_v3 }
 0x231   :  { %v4363_v7 = vpop.eup %4362  ;;  %v1213_v12 = vmul.f32 1.6666666, %v1181_v50  ;;  %v1094_v57 = vadd.f32 1.0, %v4361_v54  ;;  %3898 = vmatmul.mubr.msk.f32.gmra.mrb[34].mxu0 %vm65_vm0, %v1212_v6 }
 0x232   :  { %v4365_v60 = vpop.eup %4364  ;;  %4378 = vrcp.f32 %v1091_v11  ;;  %v1184_v62 = vmul.f32 %v4363_v7, %v5177_v8 }
 0x233   :  { %4380 = vrcp.f32 %v1094_v57  ;;  %v1093_v16 = vadd.f32 1.0, %v4365_v60  ;;  %3900 = vmatprep.mubr.msk.f32.mxu0 %vm65_vm0, %v1213_v12 }
 0x234   :  { %v4367_v14 = vpop.eup %4366  ;;  %v1216_v28 = vmul.f32 1.6666666, %v1184_v62 }
 0x235   :  { %v4369_v18 = vpop.eup %4368  ;;  %v1183_v49 = vmul.f32 %v4367_v14, %v5180_v36  ;;  %4382 = vrcp.f32 %v1093_v16  ;;  %3901 = vmatmul.mubr.msk.f32.gmra.mrb[36].mxu0 %vm65_vm0, %v1214_v15 }
 0x236   :  { %v4371_v38 = vpop.eup %4370  ;;  %v1186_v55 = vmul.f32 %v4369_v18, %v5185_v10 }
 0x237   :  { %v4373_v20 = vpop.eup %4372  ;;  %v1215_v21 = vmul.f32 1.6666666, %v1183_v49  ;;  %v1096_v46 = vadd.f32 1.0, %v4371_v38 }
 0x238   :  { %v4375_v24 = vpop.eup %4374  ;;  %v1095_v29 = vadd.f32 1.0, %v4373_v20  ;;  %v1218_v34 = vmul.f32 1.6666666, %v1186_v55 }
 0x239   :  { %v4377_v32 = vpop.eup %4376  ;;  %v1185_v33 = vmul.f32 %v4375_v24, %v5188_v13  ;;  %4384 = vrcp.f32 %v1096_v46  ;;  %3903 = vmatprep.mubr.msk.f32.mxu0 %vm65_vm0, %v1215_v21 }
 0x23a   :  { %4386 = vrcp.f32 %v1095_v29  ;;  %3904 = vmatmul.mubr.msk.f32.gmra.mrb[38].mxu0 %vm65_vm0, %v1216_v28  ;;  %v1188_v40 = vmul.f32 %v4377_v32, %v5191_v35 }
 0x23b   :  { %v1217_v8 = vmul.f32 1.6666666, %v1185_v33 }
 0x23c   :  { %v4379_v36 = vpop.eup %4378  ;;  %v1220_v42 = vmul.f32 1.6666666, %v1188_v40 }
 0x23d   :  { %v4381_v27 = vpop.eup %4380  ;;  %v1187_v61 = vmul.f32 %v4379_v36, %v5194_v19  ;;  %3906 = vmatprep.mubr.msk.f32.mxu0 %vm65_vm0, %v1217_v8 }
 0x23e   :  { %3907 = vmatmul.mubr.msk.f32.gmra.mrb[40].mxu0 %vm65_vm0, %v1218_v34  ;;  %v1190_v43 = vmul.f32 %v4381_v27, %v5198_v25 }
 0x23f   :  { %v4383_v10 = vpop.eup %4382  ;;  %v1219_v13 = vmul.f32 1.6666666, %v1187_v61 }
 0x240   :  { %v1189_v22 = vmul.f32 %v4383_v10, %v5202_v52  ;;  %v1222_v45 = vmul.f32 1.6666666, %v1190_v43  ;;  %v3403_v52 = vld [vmem:[%s5930_s5 + $0x70] sm:$0xff] }
 0x241   :  { %3909 = vmatprep.mubr.msk.f32.mxu0 %vm65_vm0, %v1219_v13 }
 0x242   :  { %v1221_v44 = vmul.f32 1.6666666, %v1189_v22  ;;  %3910 = vmatmul.mubr.msk.f32.gmra.mrb[42].mxu0 %vm65_vm0, %v1220_v42 }
 0x243   :  { %v4385_v35 = vpop.eup %4384 }
 0x244   :  { %v4387_v58 = vpop.eup %4386  ;;  %v1192_v19 = vmul.f32 %v4385_v35, %v5207_v31  ;;  %3912 = vmatprep.mubr.msk.f32.mxu0 %vm65_vm0, %v1221_v44  ;;  %v3404_v31 = vld [vmem:[%s5930_s5 + $0x78] sm:$0xff] }
 0x245   :  { %v1191_v47 = vmul.f32 %v4387_v58, %v5211_v53  ;;  %v4058_v63 = vpack.c.bf16 %v3404_v31, %v3403_v52  ;;  %v2389_v53 = vld [vmem:[%s5933_s6] sm:$0xff] }
 0x246   :  { %3913 = vmatmul.mubr.msk.f32.gmra.mrb[44].mxu0 %vm65_vm0, %v1222_v45  ;;  %v1224_v25 = vmul.f32 1.6666666, %v1192_v19  ;;  %v4062_v2 = vpack.c.bf16 %v2390_v0, %v2389_v53 }
 0x247   :  { %v1223_v48 = vmul.f32 1.6666666, %v1191_v47  ;;  %4059 = vmatprep.subr.bf16.mxu1 %v4058_v63 }
 0x248   :  { %4061 = vmatpush3.bf16.msra.mxu1 %v4058_v63  ;;  %4063 = vmatprep.subr.bf16.mxu0 %v4062_v2 }
 0x249   :  { %3915 = vmatprep.mubr.msk.f32.mxu0 %vm65_vm0, %v1223_v48  ;;  %4065 = vmatpush3.bf16.msra.mxu0 %v4062_v2 }
 0x24a   :  { %3916 = vmatmul.mubr.msk.f32.gmra.mrb[46].mxu0 %vm65_vm0, %v1224_v25 }
 0x2c7   :  { %v3872_v56 = vpop.f32.mrb[16].mxu0 }
 0x2c8   :  { %v3370_v59 = vmul.f32 -1.442695, %v3872_v56  ;;  %v1392_v37 = vpop.f32.mrb[17].mxu0 }
 0x2c9   :  { %v3369_v41 = vmul.f32 -1.442695, %v1392_v37 }
 0x2ca   :  { %4388 = vpow2.f32 %v3370_v59 }
 0x2cb   :  { %4390 = vpow2.f32 %v3369_v41  ;;  %v3875_v9 = vpop.f32.mrb[18].mxu0 }
 0x2cc   :  { %v3372_v23 = vmul.f32 -1.442695, %v3875_v9  ;;  %v1402_v1 = vpop.f32.mrb[19].mxu0 }
 0x2cd   :  { %v3371_v4 = vmul.f32 -1.442695, %v1402_v1 }
 0x2ce   :  { %4392 = vpow2.f32 %v3372_v23 }
 0x2cf   :  { %4394 = vpow2.f32 %v3371_v4  ;;  %v3878_v51 = vpop.f32.mrb[20].mxu0 }
 0x2d0   :  { %v3374_v17 = vmul.f32 -1.442695, %v3878_v51  ;;  %v1412_v5 = vpop.f32.mrb[21].mxu0 }
 0x2d1   :  { %v3373_v26 = vmul.f32 -1.442695, %v1412_v5 }
 0x2d2   :  { %4396 = vpow2.f32 %v3374_v17 }
 0x2d3   :  { %4398 = vpow2.f32 %v3373_v26 }
 0x2d4   :  { %v4389_v39 = vpop.eup %4388 }
 0x2d5   :  { %v4391_v30 = vpop.eup %4390  ;;  %v1648_v6 = vadd.f32 1.0, %v4389_v39 }
 0x2d6   :  { %v1647_v3 = vadd.f32 1.0, %v4391_v30 }
 0x2d7   :  { %4400 = vrcp.f32 %v1648_v6 }
 0x2d8   :  { %v4393_v50 = vpop.eup %4392  ;;  %4402 = vrcp.f32 %v1647_v3 }
 0x2d9   :  { %v4395_v54 = vpop.eup %4394  ;;  %v1650_v11 = vadd.f32 1.0, %v4393_v50 }
 0x2da   :  { %v1649_v7 = vadd.f32 1.0, %v4395_v54 }
 0x2db   :  { %4404 = vrcp.f32 %v1650_v11 }
 0x2dc   :  { %v4397_v12 = vpop.eup %4396  ;;  %4406 = vrcp.f32 %v1649_v7 }
 0x2dd   :  { %v4399_v57 = vpop.eup %4398  ;;  %v1652_v60 = vadd.f32 1.0, %v4397_v12 }
 0x2de   :  { %v1651_v15 = vadd.f32 1.0, %v4399_v57  ;;  %v5257_v16 = vpop.f32.mrb[22].mxu0 }
 0x2df   :  { %4408 = vrcp.f32 %v1652_v60  ;;  %v3376_v14 = vmul.f32 -1.442695, %v5257_v16  ;;  %v5260_v62 = vpop.f32.mrb[23].mxu0 }
 0x2e0   :  { %4410 = vrcp.f32 %v1651_v15  ;;  %v3375_v18 = vmul.f32 -1.442695, %v5260_v62 }
 0x2e1   :  { %v4401_v49 = vpop.eup %4400  ;;  %4412 = vpow2.f32 %v3376_v14 }
 0x2e2   :  { %v4403_v38 = vpop.eup %4402  ;;  %v1744_v20 = vmul.f32 %v4401_v49, %v3872_v56  ;;  %4414 = vpow2.f32 %v3375_v18  ;;  %v5263_v21 = vpop.f32.mrb[24].mxu0 }
 0x2e3   :  { %v1743_v46 = vmul.f32 %v4403_v38, %v1392_v37  ;;  %v3378_v24 = vmul.f32 -1.442695, %v5263_v21  ;;  %v5266_v28 = vpop.f32.mrb[25].mxu0 }
 0x2e4   :  { %v3377_v55 = vmul.f32 -1.442695, %v5266_v28  ;;  %v1776_v8 = vmul.f32 1.6666666, %v1744_v20 }
 0x2e5   :  { %v4405_v29 = vpop.eup %4404  ;;  %v1775_v32 = vmul.f32 1.6666666, %v1743_v46  ;;  %4416 = vpow2.f32 %v3378_v24 }
 0x2e6   :  { %v4407_v33 = vpop.eup %4406  ;;  %v1746_v36 = vmul.f32 %v4405_v29, %v3875_v9  ;;  %4418 = vpow2.f32 %v3377_v55  ;;  %v5269_v34 = vpop.f32.mrb[26].mxu0 }
 0x2e7   :  { %v1745_v40 = vmul.f32 %v4407_v33, %v1402_v1  ;;  %v3380_v27 = vmul.f32 -1.442695, %v5269_v34  ;;  %v5272_v61 = vpop.f32.mrb[27].mxu0  ;;  %3926 = vmatprep.mubr.msk.f32.mxu1 %vm65_vm0, %v1775_v32 }
 0x2e8   :  { %v3379_v10 = vmul.f32 -1.442695, %v5272_v61  ;;  %3927 = vmatmul.mubr.msk.f32.vlgmr.msra.gmra.mrb[48].mxu1 %vm65_vm0, %v1776_v8  ;;  %v1778_v22 = vmul.f32 1.6666666, %v1746_v36 }
 0x2e9   :  { %v4409_v13 = vpop.eup %4408  ;;  %v1777_v42 = vmul.f32 1.6666666, %v1745_v40  ;;  %4420 = vpow2.f32 %v3380_v27 }
 0x2ea   :  { %v4411_v43 = vpop.eup %4410  ;;  %v1748_v44 = vmul.f32 %v4409_v13, %v3878_v51  ;;  %4422 = vpow2.f32 %v3379_v10 }
 0x2eb   :  { %v4413_v35 = vpop.eup %4412  ;;  %v1747_v58 = vmul.f32 %v4411_v43, %v1412_v5  ;;  %3929 = vmatprep.mubr.msk.f32.mxu1 %vm65_vm0, %v1777_v42 }
 0x2ec   :  { %v4415_v45 = vpop.eup %4414  ;;  %v1654_v19 = vadd.f32 1.0, %v4413_v35  ;;  %3930 = vmatmul.mubr.msk.f32.gmra.mrb[50].mxu1 %vm65_vm0, %v1778_v22  ;;  %v1780_v52 = vmul.f32 1.6666666, %v1748_v44 }
 0x2ed   :  { %v1779_v47 = vmul.f32 1.6666666, %v1747_v58  ;;  %v1653_v48 = vadd.f32 1.0, %v4415_v45  ;;  %v5279_v25 = vpop.f32.mrb[28].mxu0 }
 0x2ee   :  { %4424 = vrcp.f32 %v1654_v19  ;;  %v3382_v31 = vmul.f32 -1.442695, %v5279_v25  ;;  %v5282_v63 = vpop.f32.mrb[29].mxu0 }
 0x2ef   :  { %v4417_v53 = vpop.eup %4416  ;;  %4426 = vrcp.f32 %v1653_v48  ;;  %v3381_v0 = vmul.f32 -1.442695, %v5282_v63  ;;  %3932 = vmatprep.mubr.msk.f32.mxu1 %vm65_vm0, %v1779_v47 }
 0x2f0   :  { %v4419_v2 = vpop.eup %4418  ;;  %v1656_v56 = vadd.f32 1.0, %v4417_v53  ;;  %4428 = vpow2.f32 %v3382_v31  ;;  %3933 = vmatmul.mubr.msk.f32.gmra.mrb[52].mxu1 %vm65_vm0, %v1780_v52 }
 0x2f1   :  { %v1655_v59 = vadd.f32 1.0, %v4419_v2  ;;  %4430 = vpow2.f32 %v3381_v0 }
 0x2f2   :  { %4432 = vrcp.f32 %v1656_v56 }
 0x2f3   :  { %v4421_v37 = vpop.eup %4420  ;;  %4434 = vrcp.f32 %v1655_v59 }
 0x2f4   :  { %v4423_v41 = vpop.eup %4422  ;;  %v1658_v9 = vadd.f32 1.0, %v4421_v37 }
 0x2f5   :  { %v1657_v23 = vadd.f32 1.0, %v4423_v41 }
 0x2f6   :  { %4436 = vrcp.f32 %v1658_v9 }
 0x2f7   :  { %4438 = vrcp.f32 %v1657_v23 }
 0x2f8   :  { %v4425_v1 = vpop.eup %4424 }
 0x2f9   :  { %v4427_v4 = vpop.eup %4426  ;;  %v1750_v51 = vmul.f32 %v4425_v1, %v5257_v16 }
 0x2fa   :  { %v4429_v17 = vpop.eup %4428  ;;  %v1749_v5 = vmul.f32 %v4427_v4, %v5260_v62 }
 0x2fb   :  { %v4431_v26 = vpop.eup %4430  ;;  %v1660_v39 = vadd.f32 1.0, %v4429_v17  ;;  %v1782_v11 = vmul.f32 1.6666666, %v1750_v51 }
 0x2fc   :  { %v4433_v30 = vpop.eup %4432  ;;  %v1781_v6 = vmul.f32 1.6666666, %v1749_v5  ;;  %v1659_v3 = vadd.f32 1.0, %v4431_v26  ;;  %v5289_v50 = vpop.f32.mrb[30].mxu0 }
 0x2fd   :  { %v4435_v54 = vpop.eup %4434  ;;  %v1752_v7 = vmul.f32 %v4433_v30, %v5263_v21  ;;  %4440 = vrcp.f32 %v1660_v39  ;;  %v3384_v12 = vmul.f32 -1.442695, %v5289_v50  ;;  %v5293_v57 = vpop.f32.mrb[31].mxu0 }
 0x2fe   :  { %v1751_v60 = vmul.f32 %v4435_v54, %v5266_v28  ;;  %4442 = vrcp.f32 %v1659_v3  ;;  %v3383_v15 = vmul.f32 -1.442695, %v5293_v57  ;;  %3935 = vmatprep.mubr.msk.f32.mxu1 %vm65_vm0, %v1781_v6 }
 0x2ff   :  { %4444 = vpow2.f32 %v3384_v12  ;;  %3936 = vmatmul.mubr.msk.f32.gmra.mrb[54].mxu1 %vm65_vm0, %v1782_v11  ;;  %v1784_v49 = vmul.f32 1.6666666, %v1752_v7 }
 0x300   :  { %v4437_v16 = vpop.eup %4436  ;;  %v1783_v14 = vmul.f32 1.6666666, %v1751_v60  ;;  %4446 = vpow2.f32 %v3383_v15  ;;  %v5299_v62 = vpop.f32.mrb[32].mxu0 }
 0x301   :  { %v4439_v18 = vpop.eup %4438  ;;  %v1754_v38 = vmul.f32 %v4437_v16, %v5269_v34  ;;  %v3386_v20 = vmul.f32 -1.442695, %v5299_v62  ;;  %v5303_v21 = vpop.f32.mrb[33].mxu0 }
 0x302   :  { %v1753_v46 = vmul.f32 %v4439_v18, %v5272_v61  ;;  %v3385_v24 = vmul.f32 -1.442695, %v5303_v21  ;;  %3938 = vmatprep.mubr.msk.f32.mxu1 %vm65_vm0, %v1783_v14 }
 0x303   :  { %4448 = vpow2.f32 %v3386_v20  ;;  %3939 = vmatmul.mubr.msk.f32.gmra.mrb[56].mxu1 %vm65_vm0, %v1784_v49  ;;  %v1786_v29 = vmul.f32 1.6666666, %v1754_v38 }
 0x304   :  { %v1785_v28 = vmul.f32 1.6666666, %v1753_v46  ;;  %4450 = vpow2.f32 %v3385_v24  ;;  %v5309_v55 = vpop.f32.mrb[34].mxu0 }
 0x305   :  { %v3388_v32 = vmul.f32 -1.442695, %v5309_v55  ;;  %v5312_v33 = vpop.f32.mrb[35].mxu0 }
 0x306   :  { %v3387_v8 = vmul.f32 -1.442695, %v5312_v33  ;;  %3941 = vmatprep.mubr.msk.f32.mxu1 %vm65_vm0, %v1785_v28 }
 0x307   :  { %v4441_v36 = vpop.eup %4440  ;;  %4452 = vpow2.f32 %v3388_v32  ;;  %3942 = vmatmul.mubr.msk.f32.gmra.mrb[58].mxu1 %vm65_vm0, %v1786_v29 }
 0x308   :  { %v4443_v34 = vpop.eup %4442  ;;  %v1756_v40 = vmul.f32 %v4441_v36, %v5279_v25  ;;  %4454 = vpow2.f32 %v3387_v8  ;;  %v5318_v27 = vpop.f32.mrb[36].mxu0 }
 0x309   :  { %v4445_v61 = vpop.eup %4444  ;;  %v1755_v10 = vmul.f32 %v4443_v34, %v5282_v63  ;;  %v3390_v13 = vmul.f32 -1.442695, %v5318_v27  ;;  %v5322_v42 = vpop.f32.mrb[37].mxu0 }
 0x30a   :  { %v4447_v43 = vpop.eup %4446  ;;  %v1662_v22 = vadd.f32 1.0, %v4445_v61  ;;  %v3389_v44 = vmul.f32 -1.442695, %v5322_v42  ;;  %v1788_v45 = vmul.f32 1.6666666, %v1756_v40 }
 0x30b   :  { %v1787_v35 = vmul.f32 1.6666666, %v1755_v10  ;;  %v1661_v58 = vadd.f32 1.0, %v4447_v43  ;;  %4456 = vpow2.f32 %v3390_v13 }
 0x30c   :  { %4458 = vrcp.f32 %v1662_v22 }
 0x30d   :  { %v4449_v19 = vpop.eup %4448  ;;  %4460 = vrcp.f32 %v1661_v58  ;;  %v5325_v47 = vpop.f32.mrb[38].mxu0  ;;  %3944 = vmatprep.mubr.msk.f32.mxu1 %vm65_vm0, %v1787_v35 }
 0x30e   :  { %v4451_v48 = vpop.eup %4450  ;;  %v1664_v25 = vadd.f32 1.0, %v4449_v19  ;;  %4462 = vpow2.f32 %v3389_v44  ;;  %v3392_v52 = vmul.f32 -1.442695, %v5325_v47  ;;  %v5329_v31 = vpop.f32.mrb[39].mxu0  ;;  %3945 = vmatmul.mubr.msk.f32.gmra.mrb[60].mxu1 %vm65_vm0, %v1788_v45 }
 0x30f   :  { %v1663_v63 = vadd.f32 1.0, %v4451_v48  ;;  %v3391_v53 = vmul.f32 -1.442695, %v5329_v31 }
 0x310   :  { %4464 = vrcp.f32 %v1664_v25 }
 0x311   :  { %v4453_v0 = vpop.eup %4452  ;;  %4466 = vrcp.f32 %v1663_v63  ;;  %v5333_v2 = vpop.f32.mrb[40].mxu0 }
 0x312   :  { %v4455_v56 = vpop.eup %4454  ;;  %v1666_v59 = vadd.f32 1.0, %v4453_v0  ;;  %4468 = vpow2.f32 %v3392_v52  ;;  %v3394_v37 = vmul.f32 -1.442695, %v5333_v2  ;;  %v5336_v41 = vpop.f32.mrb[41].mxu0 }
 0x313   :  { %v1665_v9 = vadd.f32 1.0, %v4455_v56  ;;  %4470 = vpow2.f32 %v3391_v53  ;;  %v3393_v23 = vmul.f32 -1.442695, %v5336_v41 }
 0x314   :  { %4472 = vrcp.f32 %v1666_v59 }
 0x315   :  { %v4457_v1 = vpop.eup %4456  ;;  %4474 = vrcp.f32 %v1665_v9  ;;  %v5339_v4 = vpop.f32.mrb[42].mxu0 }
 0x316   :  { %v4459_v51 = vpop.eup %4458  ;;  %v1668_v17 = vadd.f32 1.0, %v4457_v1  ;;  %4476 = vpow2.f32 %v3394_v37  ;;  %v3396_v5 = vmul.f32 -1.442695, %v5339_v4  ;;  %v5342_v26 = vpop.f32.mrb[43].mxu0 }
 0x317   :  { %v4461_v39 = vpop.eup %4460  ;;  %v1758_v30 = vmul.f32 %v4459_v51, %v5289_v50  ;;  %4478 = vpow2.f32 %v3393_v23  ;;  %v3395_v6 = vmul.f32 -1.442695, %v5342_v26 }
 0x318   :  { %v4463_v3 = vpop.eup %4462  ;;  %v1757_v54 = vmul.f32 %v4461_v39, %v5293_v57  ;;  %4480 = vrcp.f32 %v1668_v17 }
 0x319   :  { %v1667_v11 = vadd.f32 1.0, %v4463_v3  ;;  %4482 = vpow2.f32 %v3396_v5  ;;  %v5347_v7 = vpop.f32.mrb[44].mxu0  ;;  %v1790_v50 = vmul.f32 1.6666666, %v1758_v30 }
 0x31a   :  { %v4465_v12 = vpop.eup %4464  ;;  %v1789_v60 = vmul.f32 1.6666666, %v1757_v54  ;;  %4484 = vpow2.f32 %v3395_v6  ;;  %v3398_v15 = vmul.f32 -1.442695, %v5347_v7  ;;  %v5350_v16 = vpop.f32.mrb[45].mxu0 }
 0x31b   :  { %v4467_v14 = vpop.eup %4466  ;;  %v1760_v18 = vmul.f32 %v4465_v12, %v5299_v62  ;;  %4486 = vrcp.f32 %v1667_v11  ;;  %v3397_v49 = vmul.f32 -1.442695, %v5350_v16 }
 0x31c   :  { %v4469_v57 = vpop.eup %4468  ;;  %v1759_v38 = vmul.f32 %v4467_v14, %v5303_v21  ;;  %4488 = vpow2.f32 %v3398_v15  ;;  %3947 = vmatprep.mubr.msk.f32.mxu1 %vm65_vm0, %v1789_v60 }
 0x31d   :  { %v4471_v20 = vpop.eup %4470  ;;  %v1670_v46 = vadd.f32 1.0, %v4469_v57  ;;  %4490 = vpow2.f32 %v3397_v49  ;;  %v5356_v24 = vpop.f32.mrb[46].mxu0  ;;  %3948 = vmatmul.mubr.msk.f32.gmra.mrb[62].mxu1 %vm65_vm0, %v1790_v50  ;;  %v1792_v34 = vmul.f32 1.6666666, %v1760_v18 }
 0x31e   :  { %v4473_v28 = vpop.eup %4472  ;;  %v1791_v29 = vmul.f32 1.6666666, %v1759_v38  ;;  %v1669_v32 = vadd.f32 1.0, %v4471_v20  ;;  %v3400_v62 = vmul.f32 -1.442695, %v5356_v24  ;;  %v5360_v8 = vpop.f32.mrb[47].mxu0 }
 0x31f   :  { %v4475_v36 = vpop.eup %4474  ;;  %v1762_v21 = vmul.f32 %v4473_v28, %v5309_v55  ;;  %4492 = vrcp.f32 %v1670_v46  ;;  %v3399_v40 = vmul.f32 -1.442695, %v5360_v8 }
 0x320   :  { %v4477_v61 = vpop.eup %4476  ;;  %v1761_v10 = vmul.f32 %v4475_v36, %v5312_v33  ;;  %4494 = vrcp.f32 %v1669_v32  ;;  %3950 = vmatprep.mubr.msk.f32.mxu1 %vm65_vm0, %v1791_v29  ;;  %v2392_v32 = vld [vmem:[%s5933_s6 + $0x18] sm:$0xff] }
 0x321   :  { %v4479_v13 = vpop.eup %4478  ;;  %v1672_v43 = vadd.f32 1.0, %v4477_v61  ;;  %4496 = vpow2.f32 %v3400_v62  ;;  %3951 = vmatmul.mubr.msk.f32.gmra.mrb[64].mxu1 %vm65_vm0, %v1792_v34  ;;  %v1794_v55 = vmul.f32 1.6666666, %v1762_v21 }
 0x322   :  { %v4481_v22 = vpop.eup %4480  ;;  %v1793_v44 = vmul.f32 1.6666666, %v1761_v10  ;;  %v1671_v35 = vadd.f32 1.0, %v4479_v13  ;;  %4498 = vpow2.f32 %v3399_v40 }
 0x323   :  { %v4483_v58 = vpop.eup %4482  ;;  %4500 = vrcp.f32 %v1672_v43  ;;  %v1764_v48 = vmul.f32 %v4481_v22, %v5318_v27 }
 0x324   :  { %v4485_v45 = vpop.eup %4484  ;;  %4502 = vrcp.f32 %v1671_v35  ;;  %v1674_v19 = vadd.f32 1.0, %v4483_v58  ;;  %3953 = vmatprep.mubr.msk.f32.mxu1 %vm65_vm0, %v1793_v44 }
 0x325   :  { %v4487_v33 = vpop.eup %4486  ;;  %v1673_v25 = vadd.f32 1.0, %v4485_v45  ;;  %3954 = vmatmul.mubr.msk.f32.gmra.mrb[66].mxu1 %vm65_vm0, %v1794_v55  ;;  %v1796_v9 = vmul.f32 1.6666666, %v1764_v48 }
 0x326   :  { %v4489_v52 = vpop.eup %4488  ;;  %v1763_v63 = vmul.f32 %v4487_v33, %v5322_v42  ;;  %4504 = vrcp.f32 %v1674_v19 }
 0x327   :  { %v4491_v53 = vpop.eup %4490  ;;  %4506 = vrcp.f32 %v1673_v25  ;;  %v1676_v0 = vadd.f32 1.0, %v4489_v52 }
 0x328   :  { %v1795_v56 = vmul.f32 1.6666666, %v1763_v63  ;;  %v1675_v59 = vadd.f32 1.0, %v4491_v53 }
 0x329   :  { %v4493_v37 = vpop.eup %4492  ;;  %4508 = vrcp.f32 %v1676_v0 }
 0x32a   :  { %v4495_v23 = vpop.eup %4494  ;;  %v1766_v1 = vmul.f32 %v4493_v37, %v5325_v47  ;;  %4510 = vrcp.f32 %v1675_v59  ;;  %3956 = vmatprep.mubr.msk.f32.mxu1 %vm65_vm0, %v1795_v56 }
 0x32b   :  { %v4497_v27 = vpop.eup %4496  ;;  %v1765_v51 = vmul.f32 %v4495_v23, %v5329_v31  ;;  %3957 = vmatmul.mubr.msk.f32.gmra.mrb[68].mxu1 %vm65_vm0, %v1796_v9 }
 0x32c   :  { %v4499_v42 = vpop.eup %4498  ;;  %v1678_v17 = vadd.f32 1.0, %v4497_v27  ;;  %v1798_v3 = vmul.f32 1.6666666, %v1766_v1 }
 0x32d   :  { %v4501_v5 = vpop.eup %4500  ;;  %v1797_v39 = vmul.f32 1.6666666, %v1765_v51  ;;  %v1677_v30 = vadd.f32 1.0, %v4499_v42 }
 0x32e   :  { %v4503_v6 = vpop.eup %4502  ;;  %v1768_v54 = vmul.f32 %v4501_v5, %v5333_v2  ;;  %4512 = vrcp.f32 %v1678_v17 }
 0x32f   :  { %v1767_v47 = vmul.f32 %v4503_v6, %v5336_v41  ;;  %4514 = vrcp.f32 %v1677_v30  ;;  %3959 = vmatprep.mubr.msk.f32.mxu1 %vm65_vm0, %v1797_v39 }
 0x330   :  { %v4505_v11 = vpop.eup %4504  ;;  %3960 = vmatmul.mubr.msk.f32.gmra.mrb[70].mxu1 %vm65_vm0, %v1798_v3  ;;  %v1800_v60 = vmul.f32 1.6666666, %v1768_v54 }
 0x331   :  { %v4507_v31 = vpop.eup %4506  ;;  %v1799_v12 = vmul.f32 1.6666666, %v1767_v47  ;;  %v1770_v15 = vmul.f32 %v4505_v11, %v5339_v4 }
 0x332   :  { %v1769_v14 = vmul.f32 %v4507_v31, %v5342_v26 }
 0x333   :  { %v4509_v50 = vpop.eup %4508  ;;  %3962 = vmatprep.mubr.msk.f32.mxu1 %vm65_vm0, %v1799_v12  ;;  %v1802_v49 = vmul.f32 1.6666666, %v1770_v15 }
 0x334   :  { %v4511_v2 = vpop.eup %4510  ;;  %v1801_v18 = vmul.f32 1.6666666, %v1769_v14  ;;  %3963 = vmatmul.mubr.msk.f32.gmra.mrb[72].mxu1 %vm65_vm0, %v1800_v60  ;;  %v1772_v57 = vmul.f32 %v4509_v50, %v5347_v7  ;;  %v2391_v7 = vld [vmem:[%s5933_s6 + $0x10] sm:$0xff] }
 0x335   :  { %v1771_v41 = vmul.f32 %v4511_v2, %v5350_v16  ;;  %v4066_v62 = vpack.c.bf16 %v2392_v32, %v2391_v7 }
 0x336   :  { %3965 = vmatprep.mubr.msk.f32.mxu1 %vm65_vm0, %v1801_v18  ;;  %v1804_v26 = vmul.f32 1.6666666, %v1772_v57 }
 0x337   :  { %v1803_v38 = vmul.f32 1.6666666, %v1771_v41  ;;  %4067 = vmatprep.subr.bf16.mxu0 %v4066_v62 }
 0x338   :  { %v4513_v20 = vpop.eup %4512  ;;  %3966 = vmatmul.mubr.msk.f32.gmra.mrb[74].mxu1 %vm65_vm0, %v1802_v49  ;;  %4069 = vmatpush3.bf16.msra.mxu0 %v4066_v62 }
 0x339   :  { %v4515_v4 = vpop.eup %4514  ;;  %3968 = vmatprep.mubr.msk.f32.mxu1 %vm65_vm0, %v1803_v38  ;;  %v1774_v46 = vmul.f32 %v4513_v20, %v5356_v24 }
 0x33a   :  { %v1773_v28 = vmul.f32 %v4515_v4, %v5360_v8 }
 0x33b   :  { %v1806_v16 = vmul.f32 1.6666666, %v1774_v46 }
 0x33c   :  { %v1805_v29 = vmul.f32 1.6666666, %v1773_v28  ;;  %3969 = vmatmul.mubr.msk.f32.gmra.mrb[76].mxu1 %vm65_vm0, %v1804_v26 }
 0x33e   :  { %3971 = vmatprep.mubr.msk.f32.mxu1 %vm65_vm0, %v1805_v29 }
 0x340   :  { %3972 = vmatmul.mubr.msk.f32.gmra.mrb[78].mxu1 %vm65_vm0, %v1806_v16 }
 0x3bb   :  { %v3928_v24 = vpop.f32.mrb[48].mxu1 }
 0x3bc   :  { %v3438_v8 = vmul.f32 -1.442695, %v3928_v24  ;;  %v1974_v36 = vpop.f32.mrb[49].mxu1 }
 0x3bd   :  { %v3437_v34 = vmul.f32 -1.442695, %v1974_v36 }
 0x3be   :  { %4516 = vpow2.f32 %v3438_v8 }
 0x3bf   :  { %4518 = vpow2.f32 %v3437_v34  ;;  %v3931_v21 = vpop.f32.mrb[50].mxu1 }
 0x3c0   :  { %v3440_v40 = vmul.f32 -1.442695, %v3931_v21  ;;  %v1984_v61 = vpop.f32.mrb[51].mxu1 }
 0x3c1   :  { %v3439_v10 = vmul.f32 -1.442695, %v1984_v61 }
 0x3c2   :  { %4520 = vpow2.f32 %v3440_v40 }
 0x3c3   :  { %4522 = vpow2.f32 %v3439_v10  ;;  %v3934_v13 = vpop.f32.mrb[52].mxu1 }
 0x3c4   :  { %v3442_v43 = vmul.f32 -1.442695, %v3934_v13  ;;  %v1994_v22 = vpop.f32.mrb[53].mxu1 }
 0x3c5   :  { %v3441_v44 = vmul.f32 -1.442695, %v1994_v22 }
 0x3c6   :  { %4524 = vpow2.f32 %v3442_v43 }
 0x3c7   :  { %4526 = vpow2.f32 %v3441_v44 }
 0x3c8   :  { %v4517_v35 = vpop.eup %4516 }
 0x3c9   :  { %v4519_v58 = vpop.eup %4518  ;;  %v2230_v55 = vadd.f32 1.0, %v4517_v35 }
 0x3ca   :  { %v2229_v45 = vadd.f32 1.0, %v4519_v58 }
 0x3cb   :  { %4528 = vrcp.f32 %v2230_v55 }
 0x3cc   :  { %v4521_v19 = vpop.eup %4520  ;;  %4530 = vrcp.f32 %v2229_v45 }
 0x3cd   :  { %v4523_v33 = vpop.eup %4522  ;;  %v2232_v48 = vadd.f32 1.0, %v4521_v19 }
 0x3ce   :  { %v2231_v25 = vadd.f32 1.0, %v4523_v33 }
 0x3cf   :  { %4532 = vrcp.f32 %v2232_v48 }
 0x3d0   :  { %v4525_v52 = vpop.eup %4524  ;;  %4534 = vrcp.f32 %v2231_v25 }
 0x3d1   :  { %v4527_v63 = vpop.eup %4526  ;;  %v2234_v53 = vadd.f32 1.0, %v4525_v52 }
 0x3d2   :  { %v2233_v0 = vadd.f32 1.0, %v4527_v63  ;;  %v5399_v56 = vpop.f32.mrb[54].mxu1 }
 0x3d3   :  { %4536 = vrcp.f32 %v2234_v53  ;;  %v3444_v59 = vmul.f32 -1.442695, %v5399_v56  ;;  %v5402_v37 = vpop.f32.mrb[55].mxu1 }
 0x3d4   :  { %4538 = vrcp.f32 %v2233_v0  ;;  %v3443_v9 = vmul.f32 -1.442695, %v5402_v37 }
 0x3d5   :  { %v4529_v23 = vpop.eup %4528  ;;  %4540 = vpow2.f32 %v3444_v59 }
 0x3d6   :  { %v4531_v1 = vpop.eup %4530  ;;  %v2326_v27 = vmul.f32 %v4529_v23, %v3928_v24  ;;  %4542 = vpow2.f32 %v3443_v9  ;;  %v5405_v51 = vpop.f32.mrb[56].mxu1 }
 0x3d7   :  { %v2325_v42 = vmul.f32 %v4531_v1, %v1974_v36  ;;  %v3446_v17 = vmul.f32 -1.442695, %v5405_v51  ;;  %v5408_v5 = vpop.f32.mrb[57].mxu1 }
 0x3d8   :  { %v3445_v39 = vmul.f32 -1.442695, %v5408_v5  ;;  %v2358_v54 = vmul.f32 1.6666666, %v2326_v27 }
 0x3d9   :  { %v4533_v30 = vpop.eup %4532  ;;  %v2357_v6 = vmul.f32 1.6666666, %v2325_v42  ;;  %4544 = vpow2.f32 %v3446_v17 }
 0x3da   :  { %v4535_v3 = vpop.eup %4534  ;;  %v2328_v47 = vmul.f32 %v4533_v30, %v3931_v21  ;;  %4546 = vpow2.f32 %v3445_v39  ;;  %v5411_v11 = vpop.f32.mrb[58].mxu1 }
 0x3db   :  { %v2327_v31 = vmul.f32 %v4535_v3, %v1984_v61  ;;  %v3448_v12 = vmul.f32 -1.442695, %v5411_v11  ;;  %v5414_v60 = vpop.f32.mrb[59].mxu1  ;;  %3982 = vmatprep.mubr.msk.f32.mxu0 %vm65_vm0, %v2357_v6 }
 0x3dc   :  { %v3447_v15 = vmul.f32 -1.442695, %v5414_v60  ;;  %3983 = vmatmul.mubr.msk.f32.vlgmr.msra.gmra.mrb[48].mxu0 %vm65_vm0, %v2358_v54  ;;  %v2360_v18 = vmul.f32 1.6666666, %v2328_v47 }
 0x3dd   :  { %v4537_v14 = vpop.eup %4536  ;;  %v2359_v50 = vmul.f32 1.6666666, %v2327_v31  ;;  %4548 = vpow2.f32 %v3448_v12 }
 0x3de   :  { %v4539_v2 = vpop.eup %4538  ;;  %v2330_v41 = vmul.f32 %v4537_v14, %v3934_v13  ;;  %4550 = vpow2.f32 %v3447_v15 }
 0x3df   :  { %v4541_v49 = vpop.eup %4540  ;;  %v2329_v57 = vmul.f32 %v4539_v2, %v1994_v22  ;;  %3985 = vmatprep.mubr.msk.f32.mxu0 %vm65_vm0, %v2359_v50 }
 0x3e0   :  { %v4543_v38 = vpop.eup %4542  ;;  %v2236_v20 = vadd.f32 1.0, %v4541_v49  ;;  %3986 = vmatmul.mubr.msk.f32.gmra.mrb[50].mxu0 %vm65_vm0, %v2360_v18  ;;  %v2362_v28 = vmul.f32 1.6666666, %v2330_v41 }
 0x3e1   :  { %v2361_v4 = vmul.f32 1.6666666, %v2329_v57  ;;  %v2235_v26 = vadd.f32 1.0, %v4543_v38  ;;  %v5421_v46 = vpop.f32.mrb[60].mxu1 }
 0x3e2   :  { %4552 = vrcp.f32 %v2236_v20  ;;  %v3450_v29 = vmul.f32 -1.442695, %v5421_v46  ;;  %v5424_v16 = vpop.f32.mrb[61].mxu1 }
 0x3e3   :  { %v4545_v7 = vpop.eup %4544  ;;  %4554 = vrcp.f32 %v2235_v26  ;;  %v3449_v32 = vmul.f32 -1.442695, %v5424_v16  ;;  %3988 = vmatprep.mubr.msk.f32.mxu0 %vm65_vm0, %v2361_v4 }
 0x3e4   :  { %v4547_v62 = vpop.eup %4546  ;;  %v2238_v24 = vadd.f32 1.0, %v4545_v7  ;;  %4556 = vpow2.f32 %v3450_v29  ;;  %3989 = vmatmul.mubr.msk.f32.gmra.mrb[52].mxu0 %vm65_vm0, %v2362_v28 }
 0x3e5   :  { %v2237_v8 = vadd.f32 1.0, %v4547_v62  ;;  %4558 = vpow2.f32 %v3449_v32 }
 0x3e6   :  { %4560 = vrcp.f32 %v2238_v24 }
 0x3e7   :  { %v4549_v36 = vpop.eup %4548  ;;  %4562 = vrcp.f32 %v2237_v8 }
 0x3e8   :  { %v4551_v34 = vpop.eup %4550  ;;  %v2240_v21 = vadd.f32 1.0, %v4549_v36 }
 0x3e9   :  { %v2239_v40 = vadd.f32 1.0, %v4551_v34 }
 0x3ea   :  { %4564 = vrcp.f32 %v2240_v21 }
 0x3eb   :  { %4566 = vrcp.f32 %v2239_v40 }
 0x3ec   :  { %v4553_v61 = vpop.eup %4552 }
 0x3ed   :  { %v4555_v10 = vpop.eup %4554  ;;  %v2332_v13 = vmul.f32 %v4553_v61, %v5399_v56 }
 0x3ee   :  { %v4557_v43 = vpop.eup %4556  ;;  %v2331_v22 = vmul.f32 %v4555_v10, %v5402_v37 }
 0x3ef   :  { %v4559_v44 = vpop.eup %4558  ;;  %v2242_v35 = vadd.f32 1.0, %v4557_v43  ;;  %v2364_v48 = vmul.f32 1.6666666, %v2332_v13 }
 0x3f0   :  { %v4561_v58 = vpop.eup %4560  ;;  %v2363_v55 = vmul.f32 1.6666666, %v2331_v22  ;;  %v2241_v45 = vadd.f32 1.0, %v4559_v44  ;;  %v5431_v19 = vpop.f32.mrb[62].mxu1 }
 0x3f1   :  { %v4563_v33 = vpop.eup %4562  ;;  %v2334_v25 = vmul.f32 %v4561_v58, %v5405_v51  ;;  %4568 = vrcp.f32 %v2242_v35  ;;  %v3452_v52 = vmul.f32 -1.442695, %v5431_v19  ;;  %v5435_v63 = vpop.f32.mrb[63].mxu1 }
 0x3f2   :  { %v2333_v53 = vmul.f32 %v4563_v33, %v5408_v5  ;;  %4570 = vrcp.f32 %v2241_v45  ;;  %v3451_v0 = vmul.f32 -1.442695, %v5435_v63  ;;  %3991 = vmatprep.mubr.msk.f32.mxu0 %vm65_vm0, %v2363_v55 }
 0x3f3   :  { %4572 = vpow2.f32 %v3452_v52  ;;  %3992 = vmatmul.mubr.msk.f32.gmra.mrb[54].mxu0 %vm65_vm0, %v2364_v48  ;;  %v2366_v23 = vmul.f32 1.6666666, %v2334_v25 }
 0x3f4   :  { %v4565_v56 = vpop.eup %4564  ;;  %v2365_v59 = vmul.f32 1.6666666, %v2333_v53  ;;  %4574 = vpow2.f32 %v3451_v0  ;;  %v5441_v37 = vpop.f32.mrb[64].mxu1 }
 0x3f5   :  { %v4567_v9 = vpop.eup %4566  ;;  %v2336_v1 = vmul.f32 %v4565_v56, %v5411_v11  ;;  %v3454_v27 = vmul.f32 -1.442695, %v5441_v37  ;;  %v5445_v51 = vpop.f32.mrb[65].mxu1 }
 0x3f6   :  { %v2335_v42 = vmul.f32 %v4567_v9, %v5414_v60  ;;  %v3453_v17 = vmul.f32 -1.442695, %v5445_v51  ;;  %3994 = vmatprep.mubr.msk.f32.mxu0 %vm65_vm0, %v2365_v59 }
 0x3f7   :  { %4576 = vpow2.f32 %v3454_v27  ;;  %3995 = vmatmul.mubr.msk.f32.gmra.mrb[56].mxu0 %vm65_vm0, %v2366_v23  ;;  %v2368_v30 = vmul.f32 1.6666666, %v2336_v1 }
 0x3f8   :  { %v2367_v5 = vmul.f32 1.6666666, %v2335_v42  ;;  %4578 = vpow2.f32 %v3453_v17  ;;  %v5451_v39 = vpop.f32.mrb[66].mxu1 }
 0x3f9   :  { %v3456_v6 = vmul.f32 -1.442695, %v5451_v39  ;;  %v5454_v3 = vpop.f32.mrb[67].mxu1 }
 0x3fa   :  { %v3455_v54 = vmul.f32 -1.442695, %v5454_v3  ;;  %3997 = vmatprep.mubr.msk.f32.mxu0 %vm65_vm0, %v2367_v5 }
 0x3fb   :  { %v4569_v47 = vpop.eup %4568  ;;  %4580 = vpow2.f32 %v3456_v6  ;;  %3998 = vmatmul.mubr.msk.f32.gmra.mrb[58].mxu0 %vm65_vm0, %v2368_v30 }
 0x3fc   :  { %v4571_v11 = vpop.eup %4570  ;;  %v2338_v31 = vmul.f32 %v4569_v47, %v5421_v46  ;;  %4582 = vpow2.f32 %v3455_v54 }
 0x3fd   :  { %v4573_v12 = vpop.eup %4572  ;;  %v2337_v60 = vmul.f32 %v4571_v11, %v5424_v16 }
 0x3fe   :  { %v4575_v15 = vpop.eup %4574  ;;  %v2244_v14 = vadd.f32 1.0, %v4573_v12  ;;  %v5461_v50 = vpop.f32.mrb[68].mxu1  ;;  %v2370_v57 = vmul.f32 1.6666666, %v2338_v31 }
 0x3ff   :  { %v2369_v2 = vmul.f32 1.6666666, %v2337_v60  ;;  %v2243_v18 = vadd.f32 1.0, %v4575_v15  ;;  %v3458_v41 = vmul.f32 -1.442695, %v5461_v50  ;;  %v5464_v49 = vpop.f32.mrb[69].mxu1 }
 0x400   :  { %4584 = vrcp.f32 %v2244_v14  ;;  %v3457_v38 = vmul.f32 -1.442695, %v5464_v49 }
 0x401   :  { %v4577_v20 = vpop.eup %4576  ;;  %4586 = vrcp.f32 %v2243_v18  ;;  %4000 = vmatprep.mubr.msk.f32.mxu0 %vm65_vm0, %v2369_v2 }
 0x402   :  { %v4579_v4 = vpop.eup %4578  ;;  %v2246_v26 = vadd.f32 1.0, %v4577_v20  ;;  %4588 = vpow2.f32 %v3458_v41  ;;  %4001 = vmatmul.mubr.msk.f32.gmra.mrb[60].mxu0 %vm65_vm0, %v2370_v57 }
 0x403   :  { %v2245_v46 = vadd.f32 1.0, %v4579_v4  ;;  %4590 = vpow2.f32 %v3457_v38  ;;  %v5469_v28 = vpop.f32.mrb[70].mxu1 }
 0x404   :  { %4592 = vrcp.f32 %v2246_v26  ;;  %v3460_v29 = vmul.f32 -1.442695, %v5469_v28  ;;  %v5472_v16 = vpop.f32.mrb[71].mxu1 }
 0x405   :  { %v4581_v7 = vpop.eup %4580  ;;  %4594 = vrcp.f32 %v2245_v46  ;;  %v3459_v32 = vmul.f32 -1.442695, %v5472_v16 }
 0x406   :  { %v4583_v62 = vpop.eup %4582  ;;  %v2248_v24 = vadd.f32 1.0, %v4581_v7  ;;  %4596 = vpow2.f32 %v3460_v29 }
 0x407   :  { %v2247_v8 = vadd.f32 1.0, %v4583_v62  ;;  %4598 = vpow2.f32 %v3459_v32  ;;  %v5475_v36 = vpop.f32.mrb[72].mxu1 }
 0x408   :  { %4600 = vrcp.f32 %v2248_v24  ;;  %v3462_v34 = vmul.f32 -1.442695, %v5475_v36  ;;  %v5478_v21 = vpop.f32.mrb[73].mxu1 }
 0x409   :  { %4602 = vrcp.f32 %v2247_v8  ;;  %v3461_v40 = vmul.f32 -1.442695, %v5478_v21 }
 0x40a   :  { %v4585_v61 = vpop.eup %4584  ;;  %4604 = vpow2.f32 %v3462_v34 }
 0x40b   :  { %v4587_v10 = vpop.eup %4586  ;;  %v2340_v13 = vmul.f32 %v4585_v61, %v5431_v19  ;;  %4606 = vpow2.f32 %v3461_v40  ;;  %v5482_v43 = vpop.f32.mrb[74].mxu1 }
 0x40c   :  { %v4589_v22 = vpop.eup %4588  ;;  %v2339_v44 = vmul.f32 %v4587_v10, %v5435_v63  ;;  %v3464_v35 = vmul.f32 -1.442695, %v5482_v43  ;;  %v5486_v58 = vpop.f32.mrb[75].mxu1 }
 0x40d   :  { %v4591_v55 = vpop.eup %4590  ;;  %v2250_v45 = vadd.f32 1.0, %v4589_v22  ;;  %v3463_v33 = vmul.f32 -1.442695, %v5486_v58  ;;  %v2372_v19 = vmul.f32 1.6666666, %v2340_v13 }
 0x40e   :  { %v4593_v48 = vpop.eup %4592  ;;  %v2371_v25 = vmul.f32 1.6666666, %v2339_v44  ;;  %v2249_v52 = vadd.f32 1.0, %v4591_v55  ;;  %4608 = vpow2.f32 %v3464_v35 }
 0x40f   :  { %v4595_v53 = vpop.eup %4594  ;;  %v2342_v0 = vmul.f32 %v4593_v48, %v5441_v37  ;;  %4610 = vrcp.f32 %v2250_v45  ;;  %v5490_v56 = vpop.f32.mrb[76].mxu1 }
 0x410   :  { %v4597_v63 = vpop.eup %4596  ;;  %v2341_v59 = vmul.f32 %v4595_v53, %v5445_v51  ;;  %4612 = vrcp.f32 %v2249_v52  ;;  %v3466_v9 = vmul.f32 -1.442695, %v5490_v56  ;;  %v5494_v23 = vpop.f32.mrb[77].mxu1  ;;  %4003 = vmatprep.mubr.msk.f32.mxu0 %vm65_vm0, %v2371_v25 }
 0x411   :  { %v4599_v1 = vpop.eup %4598  ;;  %v2252_v27 = vadd.f32 1.0, %v4597_v63  ;;  %4614 = vpow2.f32 %v3463_v33  ;;  %v3465_v42 = vmul.f32 -1.442695, %v5494_v23  ;;  %4004 = vmatmul.mubr.msk.f32.gmra.mrb[62].mxu0 %vm65_vm0, %v2372_v19  ;;  %v2374_v51 = vmul.f32 1.6666666, %v2342_v0 }
 0x412   :  { %v4601_v37 = vpop.eup %4600  ;;  %v2373_v17 = vmul.f32 1.6666666, %v2341_v59  ;;  %v2251_v5 = vadd.f32 1.0, %v4599_v1  ;;  %4616 = vpow2.f32 %v3466_v9 }
 0x413   :  { %v4603_v30 = vpop.eup %4602  ;;  %v2344_v6 = vmul.f32 %v4601_v37, %v5451_v39  ;;  %4618 = vrcp.f32 %v2252_v27  ;;  %v5500_v54 = vpop.f32.mrb[78].mxu1 }
 0x414   :  { %v4605_v47 = vpop.eup %4604  ;;  %v2343_v11 = vmul.f32 %v4603_v30, %v5454_v3  ;;  %4620 = vrcp.f32 %v2251_v5  ;;  %v3468_v31 = vmul.f32 -1.442695, %v5500_v54  ;;  %v5504_v12 = vpop.f32.mrb[79].mxu1  ;;  %4006 = vmatprep.mubr.msk.f32.mxu0 %vm65_vm0, %v2373_v17  ;;  %v5538_v5 = vld [vmem:[%s5935_s2] sm:$0xff]  ;;  %v5543_v30 = vld [vmem:[%s5935_s2 + $0x8] sm:$0xff] }
 0x415   :  { %v4607_v60 = vpop.eup %4606  ;;  %v2254_v15 = vadd.f32 1.0, %v4605_v47  ;;  %4622 = vpow2.f32 %v3465_v42  ;;  %v3467_v14 = vmul.f32 -1.442695, %v5504_v12  ;;  %4007 = vmatmul.mubr.msk.f32.gmra.mrb[64].mxu0 %vm65_vm0, %v2374_v51  ;;  %v2376_v18 = vmul.f32 1.6666666, %v2344_v6  ;;  %5939 = vst [vmem:[#allocation5_spill] sm:$0xff] %v5538_v5 }
 0x416   :  { %v2375_v39 = vmul.f32 1.6666666, %v2343_v11  ;;  %v2253_v2 = vadd.f32 1.0, %v4607_v60  ;;  %4624 = vpow2.f32 %v3468_v31  ;;  %v5548_v51 = vld [vmem:[%s5935_s2 + $0x10] sm:$0xff]  ;;  %v5563_v47 = vld [vmem:[%s5935_s2 + $0x20] sm:$0xff]  ;;  %v5568_v11 = vld [vmem:[%s5935_s2 + $0x28] sm:$0xff] }
 0x417   :  { %4626 = vrcp.f32 %v2254_v15  ;;  %5941 = vst [vmem:[#allocation7_spill] sm:$0xff] %v5568_v11  ;;  %v5573_v31 = vld [vmem:[%s5935_s2 + $0x30] sm:$0xff]  ;;  %v5583_v60 = vld [vmem:[%s5935_s2 + $0x40] sm:$0xff]  ;;  %v5588_v15 = vld [vmem:[%s5935_s2 + $0x48] sm:$0xff] }
 0x418   :  { %v4609_v3 = vpop.eup %4608  ;;  %4628 = vrcp.f32 %v2253_v2  ;;  %4009 = vmatprep.mubr.msk.f32.mxu0 %vm65_vm0, %v2375_v39  ;;  %v5598_v39 = vld [vmem:[%s5935_s2 + $0x58] sm:$0xff]  ;;  %v5603_v2 = vld [vmem:[%s5935_s2 + $0x60] sm:$0xff] }
 0x419   :  { %v4611_v41 = vpop.eup %4610  ;;  %v2256_v57 = vadd.f32 1.0, %v4609_v3  ;;  %4630 = vpow2.f32 %v3467_v14  ;;  %4010 = vmatmul.mubr.msk.f32.gmra.mrb[66].mxu0 %vm65_vm0, %v2376_v18  ;;  %v5593_v14 = vld [vmem:[%s5935_s2 + $0x50] sm:$0xff]  ;;  %5944 = vst [vmem:[#allocation10_spill] sm:$0xff] %v5603_v2  ;;  %v5608_v18 = vld [vmem:[%s5935_s2 + $0x68] sm:$0xff] }
 0x41a   :  { %v4613_v38 = vpop.eup %4612  ;;  %v2346_v20 = vmul.f32 %v4611_v41, %v5461_v50  ;;  %5943 = vst [vmem:[#allocation9_spill] sm:$0xff] %v5593_v14  ;;  %v5613_v3 = vld [vmem:[%s5935_s2 + $0x70] sm:$0xff]  ;;  %v5618_v41 = vld [vmem:[%s5935_s2 + $0x78] sm:$0xff] }
 0x41b   :  { %v4615_v4 = vpop.eup %4614  ;;  %v2345_v26 = vmul.f32 %v4613_v38, %v5464_v49  ;;  %4632 = vrcp.f32 %v2256_v57  ;;  %5945 = vst [vmem:[#allocation11_spill] sm:$0xff] %v5613_v3  ;;  %5946 = vst [vmem:[#allocation12_spill] sm:$0xff] %v5618_v41  ;;  %v5623_v57 = vld [vmem:[%s5935_s2 + $0x80] sm:$0xff]  ;;  %v5628_v38 = vld [vmem:[%s5935_s2 + $0x88] sm:$0xff] }
 0x41c   :  { %v4617_v46 = vpop.eup %4616  ;;  %v2255_v29 = vadd.f32 1.0, %v4615_v4  ;;  %v2378_v8 = vmul.f32 1.6666666, %v2346_v20  ;;  %v5633_v20 = vld [vmem:[%s5935_s2 + $0x90] sm:$0xff]  ;;  %v5638_v4 = vld [vmem:[%s5935_s2 + $0x98] sm:$0xff] }
 0x41d   :  { %v4619_v7 = vpop.eup %4618  ;;  %v2377_v32 = vmul.f32 1.6666666, %v2345_v26  ;;  %v2258_v62 = vadd.f32 1.0, %v4617_v46  ;;  %5947 = vst [vmem:[#allocation13_spill] sm:$0xff] %v5638_v4  ;;  %v5643_v26 = vld [vmem:[%s5935_s2 + $0xa0] sm:$0xff]  ;;  %v5648_v46 = vld [vmem:[%s5935_s2 + $0xa8] sm:$0xff] }
 0x41e   :  { %v4621_v24 = vpop.eup %4620  ;;  %v2348_v34 = vmul.f32 %v4619_v7, %v5469_v28  ;;  %4634 = vrcp.f32 %v2255_v29  ;;  %v5653_v29 = vld [vmem:[%s5935_s2 + $0xb0] sm:$0xff]  ;;  %v5658_v7 = vld [vmem:[%s5935_s2 + $0xb8] sm:$0xff] }
 0x41f   :  { %v4623_v40 = vpop.eup %4622  ;;  %v2347_v61 = vmul.f32 %v4621_v24, %v5472_v16  ;;  %4636 = vrcp.f32 %v2258_v62  ;;  %4012 = vmatprep.mubr.msk.f32.mxu0 %vm65_vm0, %v2377_v32  ;;  %5948 = vst [vmem:[#allocation14_spill] sm:$0xff] %v5658_v7  ;;  %v5663_v32 = vld [vmem:[%s5935_s2 + $0xc0] sm:$0xff]  ;;  %v5668_v62 = vld [vmem:[%s5935_s2 + $0xc8] sm:$0xff]  ;;  %v5673_v24 = vld [vmem:[%s5935_s2 + $0xd0] sm:$0xff] }
 0x420   :  { %v4625_v50 = vpop.eup %4624  ;;  %v2257_v10 = vadd.f32 1.0, %v4623_v40  ;;  %4013 = vmatmul.mubr.msk.f32.gmra.mrb[68].mxu0 %vm65_vm0, %v2378_v8  ;;  %v2380_v35 = vmul.f32 1.6666666, %v2348_v34  ;;  %v5678_v8 = vld [vmem:[%s5935_s2 + $0xd8] sm:$0xff]  ;;  %v5683_v34 = vld [vmem:[%s5935_s2 + $0xe0] sm:$0xff]  ;;  %v5688_v40 = vld [vmem:[%s5935_s2 + $0xe8] sm:$0xff] }
 0x421   :  { %v4627_v49 = vpop.eup %4626  ;;  %v2379_v13 = vmul.f32 1.6666666, %v2347_v61  ;;  %v2260_v22 = vadd.f32 1.0, %v4625_v50  ;;  %5949 = vst [vmem:[#allocation15_spill] sm:$0xff] %v5678_v8  ;;  %v5693_v61 = vld [vmem:[%s5935_s2 + $0xf0] sm:$0xff]  ;;  %v5698_v50 = vld [vmem:[%s5935_s2 + $0xf8] sm:$0xff] }
 0x422   :  { %v4629_v44 = vpop.eup %4628  ;;  %v2350_v55 = vmul.f32 %v4627_v49, %v5475_v36  ;;  %4638 = vrcp.f32 %v2257_v10  ;;  %v5703_v10 = vld [vmem:[%s5936_s4] sm:$0x77] }
 0x423   :  { %v4631_v28 = vpop.eup %4630  ;;  %v2349_v45 = vmul.f32 %v4629_v44, %v5478_v21  ;;  %4640 = vrcp.f32 %v2260_v22  ;;  %4015 = vmatprep.mubr.msk.f32.mxu0 %vm65_vm0, %v2379_v13  ;;  %5950 = vst [vmem:[#allocation16_spill] sm:$0xff] %v5703_v10 }
 0x424   :  { %v2259_v16 = vadd.f32 1.0, %v4631_v28  ;;  %4016 = vmatmul.mubr.msk.f32.gmra.mrb[70].mxu0 %vm65_vm0, %v2380_v35  ;;  %v2382_v25 = vmul.f32 1.6666666, %v2350_v55 }
 0x425   :  { %v4633_v33 = vpop.eup %4632  ;;  %v2381_v48 = vmul.f32 1.6666666, %v2349_v45 }
 0x426   :  { %4642 = vrcp.f32 %v2259_v16  ;;  %v2352_v53 = vmul.f32 %v4633_v33, %v5482_v43 }
 0x427   :  { %4018 = vmatprep.mubr.msk.f32.mxu0 %vm65_vm0, %v2381_v48 }
 0x428   :  { %v4635_v52 = vpop.eup %4634  ;;  %4019 = vmatmul.mubr.msk.f32.gmra.mrb[72].mxu0 %vm65_vm0, %v2382_v25  ;;  %v2384_v63 = vmul.f32 1.6666666, %v2352_v53 }
 0x429   :  { %v4637_v36 = vpop.eup %4636  ;;  %v2351_v21 = vmul.f32 %v4635_v52, %v5486_v58 }
 0x42a   :  { %v2354_v59 = vmul.f32 %v4637_v36, %v5490_v56 }
 0x42b   :  { %v2383_v19 = vmul.f32 1.6666666, %v2351_v21 }
 0x42c   :  { %v4639_v0 = vpop.eup %4638  ;;  %v2386_v43 = vmul.f32 1.6666666, %v2354_v59 }
 0x42d   :  { %v4641_v9 = vpop.eup %4640  ;;  %v2353_v1 = vmul.f32 %v4639_v0, %v5494_v23  ;;  %4021 = vmatprep.mubr.msk.f32.mxu0 %vm65_vm0, %v2383_v19  ;;  %v2747_v23 = vlaneseq }
 0x42e   :  { %4022 = vmatmul.mubr.msk.f32.gmra.mrb[74].mxu0 %vm65_vm0, %v2384_v63  ;;  %v2356_v37 = vmul.f32 %v4641_v9, %v5500_v54  ;;  %v5558_v54 = vld [vmem:[%s5935_s2 + $0x18] sm:$0xff] }
 0x42f   :  { %v2385_v27 = vmul.f32 1.6666666, %v2353_v1  ;;  %v5550_v6 = vand.u32 127, %v2747_v23 }
 0x430   :  { %v4643_v42 = vpop.eup %4642  ;;  %v2388_v56 = vmul.f32 1.6666666, %v2356_v37 }
 0x431   :  { %v2355_v17 = vmul.f32 %v4643_v42, %v5504_v12  ;;  %4024 = vmatprep.mubr.msk.f32.mxu0 %vm65_vm0, %v2385_v27  ;;  %5940 = vst [vmem:[#allocation6_spill] sm:$0xff] %v5550_v6  ;;  %v5578_v12 = vld [vmem:[%s5935_s2 + $0x38] sm:$0xff] }
 0x432   :  { %4025 = vmatmul.mubr.msk.f32.gmra.mrb[76].mxu0 %vm65_vm0, %v2386_v43  ;;  %5942 = vst [vmem:[#allocation8_spill] sm:$0xff] %v5578_v12 }
 0x433   :  { %v2387_v58 = vmul.f32 1.6666666, %v2355_v17 }
 0x435   :  { %4027 = vmatprep.mubr.msk.f32.mxu0 %vm65_vm0, %v2387_v58 }
 0x436   :  { %4028 = vmatmul.mubr.msk.f32.gmra.mrb[78].mxu0 %vm65_vm0, %v2388_v56 }
 0x4af   :  { %v5705_v49 = vpop.f32.mrb[48].mxu0 }
 0x4b0   :  { %v5707_v13 = vpop.f32.mrb[49].mxu0 }
 0x4b1   :  { %5951 = vst [vmem:[#allocation17_spill] sm:$0xff] %v5707_v13 }
 0x4b3   :  { %v5709_v22 = vpop.f32.mrb[50].mxu0 }
 0x4b4   :  { %v5711_v44 = vpop.f32.mrb[51].mxu0 }
 0x4b7   :  { %v5713_v35 = vpop.f32.mrb[52].mxu0 }
 0x4b8   :  { %v5715_v55 = vpop.f32.mrb[53].mxu0 }
 0x4c6   :  { %v5717_v28 = vpop.f32.mrb[54].mxu0 }
 0x4c7   :  { %v5719_v45 = vpop.f32.mrb[55].mxu0 }
 0x4ca   :  { %v5721_v16 = vpop.f32.mrb[56].mxu0 }
 0x4cb   :  { %v5723_v33 = vpop.f32.mrb[57].mxu0 }
 0x4ce   :  { %v5725_v48 = vpop.f32.mrb[58].mxu0 }
 0x4cf   :  { %v5727_v25 = vpop.f32.mrb[59].mxu0 }
 0x4d5   :  { %v5729_v52 = vpop.f32.mrb[60].mxu0 }
 0x4d6   :  { %v5731_v53 = vpop.f32.mrb[61].mxu0 }
 0x4e4   :  { %v5733_v36 = vpop.f32.mrb[62].mxu0 }
 0x4e5   :  { %5952 = vst [vmem:[#allocation18_spill] sm:$0xff] %v5733_v36  ;;  %v5735_v21 = vpop.f32.mrb[63].mxu0 }
 0x4e6   :  { %5953 = vst [vmem:[#allocation19_spill] sm:$0xff] %v5735_v21 }
 0x4e8   :  { %v5737_v19 = vpop.f32.mrb[64].mxu0 }
 0x4e9   :  { %v5739_v0 = vpop.f32.mrb[65].mxu0 }
 0x4ea   :  { %5954 = vst [vmem:[#allocation20_spill] sm:$0xff] %v5739_v0 }
 0x4ec   :  { %v5741_v63 = vpop.f32.mrb[66].mxu0 }
 0x4ed   :  { %v5743_v59 = vpop.f32.mrb[67].mxu0 }
 0x4f3   :  { %v5745_v9 = vpop.f32.mrb[68].mxu0 }
 0x4f4   :  { %5955 = vst [vmem:[#allocation21_spill] sm:$0xff] %v5745_v9  ;;  %v5747_v1 = vpop.f32.mrb[69].mxu0 }
 0x4f5   :  { %5956 = vst [vmem:[#allocation22_spill] sm:$0xff] %v5747_v1 }
 0x4f7   :  { %v5749_v27 = vpop.f32.mrb[70].mxu0 }
 0x4f8   :  { %v5751_v42 = vpop.f32.mrb[71].mxu0 }
 0x4fb   :  { %v5753_v43 = vpop.f32.mrb[72].mxu0 }
 0x4fc   :  { %v5755_v37 = vpop.f32.mrb[73].mxu0 }
 0x501   :  { %v5757_v17 = vpop.f32.mrb[74].mxu0 }
 0x502   :  { %v5759_v58 = vpop.f32.mrb[75].mxu0 }
 0x505   :  { %v5761_v56 = vpop.f32.mrb[76].mxu0  ;;  %3198 = sbr.rel (%p3197_p0) target bundleno = 1740 (0x6cc), region = 49 }
 0x506   :  { %v5763_v23 = vpop.f32.mrb[77].mxu0 }
 0x509   :  { %v5765_v6 = vpop.f32.mrb[78].mxu0 }
 0x50a   :  { %5957 = vst [vmem:[#allocation23_spill] sm:$0xff] %v5765_v6  ;;  %v5767_v10 = vpop.f32.mrb[79].mxu0 }
 0x50b   :  { %5958 = vst [vmem:[#allocation24_spill] sm:$0xff] %v5767_v10 }
 0x50c LB: > { %v5959_v0 = vld [vmem:[#allocation20_spill] sm:$0xff]  ;;  %v4735_v36 = vmov 0   ;;  %s3501_s10 = sshll.u32 %s4732_s0, 7  ;;  %v5960_v5 = vld [vmem:[#allocation5_spill] sm:$0xff]  ;;  %v5963_v1 = vld [vmem:[#allocation22_spill] sm:$0xff]  ;;  %s3534_s11 = sshll.u32 %s4732_s0, 2  ;;  %s4732_s0 = sphi %s5929_s0, %s2755_s0  }
 0x50d   : > { %v4645_v41 = vpack.i.bf16 %v5737_v19, %v5959_v0  ;;  %4644 = vset.pattern.permute.xlu1 %v4735_v36  ;;  %4650 = vset.pattern.permute.xlu0 %v4735_v36  ;;  %v5787_v21 = vstv %s3501_s10  ;;  %v5961_v13 = vld [vmem:[#allocation17_spill] sm:$0xff]  ;;  %v5965_v11 = vld [vmem:[#allocation7_spill] sm:$0xff]  ;;  %v5966_v7 = vld [vmem:[#allocation14_spill] sm:$0xff]  ;;  %s3186_s12 = scalar_lea.vmem %s5931_s7, %s3534_s11  ;;  %s2755_s0 = sadd.s32 1, %s4732_s0  }
 0x50e   : > { %v2776_v6 = vsub.s32 %v5623_v57, %v5787_v21  ;;  %v2760_v10 = vsub.s32 %v5960_v5, %v5787_v21  ;;  %v2777_v3 = vsub.s32 %v5628_v38, %v5787_v21  ;;  %v4651_v0 = vpack.i.bf16 %v5705_v49, %v5961_v13  ;;  %v5962_v4 = vld [vmem:[#allocation13_spill] sm:$0xff]  ;;  %v5967_v12 = vld [vmem:[#allocation8_spill] sm:$0xff]  ;;  %v5968_v8 = vld [vmem:[#allocation15_spill] sm:$0xff]  ;;  %p2754_p1 = scmp.ge.s32.totalorder %s2755_s0, %s2751_s19 }
 0x50f   : > { %4646 = vperm.xlu1 %4644, %v4645_v41   ;;  %v2761_v41 = vsub.s32 %v5543_v30, %v5787_v21  ;;  %v2779_v36 = vsub.s32 %v5962_v4, %v5787_v21  ;;  %v5964_v9 = vld [vmem:[#allocation21_spill] sm:$0xff]  ;;  %v5970_v2 = vld [vmem:[#allocation10_spill] sm:$0xff] }
 0x510   : > { %2841 = vperm.xlu0 %4650, %v2776_v6   ;;  %v2778_v6 = vsub.s32 %v5633_v20, %v5787_v21  ;;  %v5969_v14 = vld [vmem:[#allocation9_spill] sm:$0xff]  ;;  %v5975_v5 = vld [vmem:[#allocation18_spill] sm:$0xff] }
 0x511   : > { %v5973_v4 = vld [vmem:[#allocation23_spill] sm:$0xff] }
 0x513   : > { %2793 = vperm.xlu1 %4644, %v2760_v10   ;;  %v2762_v10 = vsub.s32 %v5548_v51, %v5787_v21 }
 0x514   : > { %2844 = vperm.xlu0 %4650, %v2777_v3   ;;  %v4656_v3 = vpack.i.bf16 %v5741_v63, %v5743_v59 }
 0x517   : > { %4652 = vperm.xlu1 %4644, %v4651_v0   ;;  %v4661_v0 = vpack.i.bf16 %v5709_v22, %v5711_v44 }
 0x518   : > { %2796 = vperm.xlu0 %4650, %v2761_v41   ;;  %v2763_v41 = vsub.s32 %v5558_v54, %v5787_v21 }
 0x51b   : > { %2850 = vperm.xlu1 %4644, %v2779_v36   ;;  %v2781_v36 = vsub.s32 %v5648_v46, %v5787_v21 }
 0x51c   : > { %2847 = vperm.xlu0 %4650, %v2778_v6   ;;  %v2780_v6 = vsub.s32 %v5643_v26, %v5787_v21 }
 0x51f   : > { %2799 = vperm.xlu1 %4644, %v2762_v10   ;;  %v2764_v10 = vsub.s32 %v5563_v47, %v5787_v21 }
 0x520   : > { %4657 = vperm.xlu0 %4650, %v4656_v3   ;;  %v4666_v3 = vpack.i.bf16 %v5964_v9, %v5963_v1 }
 0x523   : > { %4662 = vperm.xlu1 %4644, %v4661_v0   ;;  %v4671_v0 = vpack.i.bf16 %v5713_v35, %v5715_v55 }
 0x524   : > { %2802 = vperm.xlu0 %4650, %v2763_v41   ;;  %v2765_v41 = vsub.s32 %v5965_v11, %v5787_v21 }
 0x527   : > { %2856 = vperm.xlu1 %4644, %v2781_v36   ;;  %v2783_v36 = vsub.s32 %v5966_v7, %v5787_v21 }
 0x528   : > { %2853 = vperm.xlu0 %4650, %v2780_v6   ;;  %v2782_v6 = vsub.s32 %v5653_v29, %v5787_v21 }
 0x52b   : > { %2805 = vperm.xlu1 %4644, %v2764_v10   ;;  %v2766_v10 = vsub.s32 %v5573_v31, %v5787_v21 }
 0x52c   : > { %4667 = vperm.xlu0 %4650, %v4666_v3   ;;  %v4676_v3 = vpack.i.bf16 %v5749_v27, %v5751_v42 }
 0x52f   : > { %4672 = vperm.xlu1 %4644, %v4671_v0   ;;  %v4681_v0 = vpack.i.bf16 %v5717_v28, %v5719_v45 }
 0x530   : > { %2808 = vperm.xlu0 %4650, %v2765_v41   ;;  %v2767_v41 = vsub.s32 %v5967_v12, %v5787_v21 }
 0x533   : > { %2862 = vperm.xlu1 %4644, %v2783_v36   ;;  %v2785_v36 = vsub.s32 %v5668_v62, %v5787_v21 }
 0x534   : > { %2859 = vperm.xlu0 %4650, %v2782_v6   ;;  %v2784_v6 = vsub.s32 %v5663_v32, %v5787_v21 }
 0x537   : > { %2811 = vperm.xlu1 %4644, %v2766_v10   ;;  %v2768_v10 = vsub.s32 %v5583_v60, %v5787_v21 }
 0x538   : > { %4677 = vperm.xlu0 %4650, %v4676_v3   ;;  %v4686_v3 = vpack.i.bf16 %v5753_v43, %v5755_v37 }
 0x53b   : > { %4682 = vperm.xlu1 %4644, %v4681_v0   ;;  %v4691_v0 = vpack.i.bf16 %v5721_v16, %v5723_v33 }
 0x53c   : > { %2814 = vperm.xlu0 %4650, %v2767_v41   ;;  %v2769_v41 = vsub.s32 %v5588_v15, %v5787_v21 }
 0x53f   : > { %2868 = vperm.xlu1 %4644, %v2785_v36   ;;  %v2787_v36 = vsub.s32 %v5968_v8, %v5787_v21  ;;  %v5976_v8 = vld [vmem:[#allocation12_spill] sm:$0xff] }
 0x540   : > { %2865 = vperm.xlu0 %4650, %v2784_v6   ;;  %v2786_v6 = vsub.s32 %v5673_v24, %v5787_v21 }
 0x543   : > { %2817 = vperm.xlu1 %4644, %v2768_v10   ;;  %v2770_v10 = vsub.s32 %v5969_v14, %v5787_v21  ;;  %v5978_v14 = vld [vmem:[#allocation6_spill] sm:$0xff] }
 0x544   : > { %4687 = vperm.xlu0 %4650, %v4686_v3   ;;  %v4696_v3 = vpack.i.bf16 %v5757_v17, %v5759_v58 }
 0x547   : > { %4692 = vperm.xlu1 %4644, %v4691_v0   ;;  %v4701_v0 = vpack.i.bf16 %v5725_v48, %v5727_v25 }
 0x548   : > { %2820 = vperm.xlu0 %4650, %v2769_v41   ;;  %v2771_v41 = vsub.s32 %v5598_v39, %v5787_v21 }
 0x54b   : > { %2874 = vperm.xlu1 %4644, %v2787_v36   ;;  %v2789_v36 = vsub.s32 %v5688_v40, %v5787_v21 }
 0x54c   : > { %2871 = vperm.xlu0 %4650, %v2786_v6   ;;  %v2788_v6 = vsub.s32 %v5683_v34, %v5787_v21 }
 0x54f   : > { %2823 = vperm.xlu1 %4644, %v2770_v10   ;;  %v2772_v10 = vsub.s32 %v5970_v2, %v5787_v21  ;;  %v5972_v2 = vld [vmem:[#allocation24_spill] sm:$0xff] }
 0x550   : > { %4697 = vperm.xlu0 %4650, %v4696_v3   ;;  %v4706_v3 = vpack.i.bf16 %v5761_v56, %v5763_v23 }
 0x553   : > { %4702 = vperm.xlu1 %4644, %v4701_v0   ;;  %v4711_v0 = vpack.i.bf16 %v5729_v52, %v5731_v53 }
 0x554   : > { %2826 = vperm.xlu0 %4650, %v2771_v41   ;;  %v2773_v41 = vsub.s32 %v5608_v18, %v5787_v21 }
 0x557   : > { %2880 = vperm.xlu1 %4644, %v2789_v36   ;;  %v2791_v36 = vsub.s32 %v5698_v50, %v5787_v21 }
 0x558   : > { %2877 = vperm.xlu0 %4650, %v2788_v6   ;;  %v2790_v6 = vsub.s32 %v5693_v61, %v5787_v21 }
 0x55b   : > { %2829 = vperm.xlu1 %4644, %v2772_v10   ;;  %v5971_v10 = vld [vmem:[#allocation11_spill] sm:$0xff] }
 0x55c   : > { %4707 = vperm.xlu0 %4650, %v4706_v3   ;;  %v2774_v1 = vsub.s32 %v5971_v10, %v5787_v21  ;;  %v4716_v3 = vpack.i.bf16 %v5973_v4, %v5972_v2 }
 0x55f   : > { %4712 = vperm.xlu1 %4644, %v4711_v0   ;;  %v5974_v0 = vld [vmem:[#allocation19_spill] sm:$0xff] }
 0x560   : > { %2832 = vperm.xlu0 %4650, %v2773_v41   ;;  %v4721_v7 = vpack.i.bf16 %v5975_v5, %v5974_v0  ;;  %v2775_v41 = vsub.s32 %v5976_v8, %v5787_v21 }
 0x563   : > { %2886 = vperm.xlu1 %4644, %v2791_v36   ;;  %v5977_v36 = vld [vmem:[#allocation16_spill] sm:$0xff] }
 0x564   : > { %2883 = vperm.xlu0 %4650, %v2790_v6   ;;  %v3113_v9 = vcombine.high %v5977_v36, %v5977_v36 }
 0x566   : > { %3179 = vmatprep.mubr.f32.mxu0 %v3113_v9 }
 0x567   : > { %2835 = vperm.xlu1 %4644, %v2774_v1  }
 0x568   : > { %4717 = vperm.xlu0 %4650, %v4716_v3  }
 0x56b   : > { %4722 = vperm.xlu1 %4644, %v4721_v7  }
 0x56c   : > { %2838 = vperm.xlu0 %4650, %v2775_v41  }
 0x58e   : > { %v4647_v11 = vpop.permute.xlu1 %4646 }
 0x58f   : > { %v4649_v10 = vunpack.i.h.bf16 %v4647_v11  ;;  %v4648_v6 = vunpack.i.l.bf16 %v4647_v11  ;;  %v2842_v1 = vpop.permute.xlu0 %2841 }
 0x590   : > { %vm2904_vm1 = vcmp.eq.s32.totalorder %v2842_v1, %v5978_v14 }
 0x591   : > { %v4070_v4 = vpack.c.bf16 %v4649_v10, %v4648_v6 }
 0x592   : > { %v2794_v12 = vpop.permute.xlu1 %2793 }
 0x593   : > { %v2845_v13 = vpop.permute.xlu0 %2844  ;;  %vm2888_vm4 = vcmp.eq.s32.totalorder %v2794_v12, %v5978_v14 }
 0x594   : > { %vm2905_vm2 = vcmp.eq.s32.totalorder %v2845_v13, %v5978_v14 }
 0x595   : > { %vm4071_vm3 = vmpackc.low %vm2905_vm2, %vm2904_vm1 }
 0x596   : > { %v4653_v2 = vpop.permute.xlu1 %4652  ;;  %4072 = vmatprep.subr.msk.bf16.mxu0 %vm4071_vm3, %v4070_v4 }
 0x597   : > { %v4655_v5 = vunpack.i.h.bf16 %v4653_v2  ;;  %v4654_v7 = vunpack.i.l.bf16 %v4653_v2  ;;  %v2797_v8 = vpop.permute.xlu0 %2796 }
 0x598   : > { %vm2889_vm5 = vcmp.eq.s32.totalorder %v2797_v8, %v5978_v14 }
 0x599   : > { %v4073_v9 = vpack.c.bf16 %v4655_v5, %v4654_v7  ;;  %vm4074_vm6 = vmpackc.low %vm2889_vm5, %vm2888_vm4 }
 0x59a   : > { %v2851_v21 = vpop.permute.xlu1 %2850 }
 0x59b   : > { %4075 = vmatpush3.bf16.msk.msra.mxu0 %vm4074_vm6, %v4073_v9  ;;  %v2848_v11 = vpop.permute.xlu0 %2847  ;;  %vm2907_vm8 = vcmp.eq.s32.totalorder %v2851_v21, %v5978_v14 }
 0x59c   : > { %vm2906_vm7 = vcmp.eq.s32.totalorder %v2848_v11, %v5978_v14 }
 0x59d   : > { %vm4077_vm9 = vmpackc.low %vm2907_vm8, %vm2906_vm7 }
 0x59e   : > { %v2800_v3 = vpop.permute.xlu1 %2799 }
 0x59f   : > { %v4658_v0 = vpop.permute.xlu0 %4657  ;;  %vm2890_vm10 = vcmp.eq.s32.totalorder %v2800_v3, %v5978_v14 }
 0x5a0   : > { %v4660_v13 = vunpack.i.h.bf16 %v4658_v0  ;;  %v4659_v10 = vunpack.i.l.bf16 %v4658_v0 }
 0x5a2   : > { %v4663_v41 = vpop.permute.xlu1 %4662  ;;  %v4076_v2 = vpack.c.bf16 %v4660_v13, %v4659_v10 }
 0x5a3   : > { %v4665_v6 = vunpack.i.h.bf16 %v4663_v41  ;;  %v4664_v1 = vunpack.i.l.bf16 %v4663_v41  ;;  %v2803_v12 = vpop.permute.xlu0 %2802 }
 0x5a4   : > { %vm2891_vm11 = vcmp.eq.s32.totalorder %v2803_v12, %v5978_v14  ;;  %4078 = vmatprep.subr.msk.bf16.mxu0 %vm4077_vm9, %v4076_v2 }
 0x5a5   : > { %v4079_v5 = vpack.c.bf16 %v4665_v6, %v4664_v1  ;;  %vm4080_vm12 = vmpackc.low %vm2891_vm11, %vm2890_vm10 }
 0x5a6   : > { %v2857_v4 = vpop.permute.xlu1 %2856 }
 0x5a7   : > { %4081 = vmatpush3.bf16.msk.msra.mxu0 %vm4080_vm12, %v4079_v5  ;;  %v2854_v7 = vpop.permute.xlu0 %2853  ;;  %vm2909_vm14 = vcmp.eq.s32.totalorder %v2857_v4, %v5978_v14 }
 0x5a8   : > { %vm2908_vm13 = vcmp.eq.s32.totalorder %v2854_v7, %v5978_v14 }
 0x5a9   : > { %vm4083_vm15 = vmpackc.low %vm2909_vm14, %vm2908_vm13 }
 0x5aa   : > { %v2806_v8 = vpop.permute.xlu1 %2805 }
 0x5ab   : > { %v4668_v9 = vpop.permute.xlu0 %4667  ;;  %vm2892_vm0 = vcmp.eq.s32.totalorder %v2806_v8, %v5978_v14 }
 0x5ac   : > { %v4670_v0 = vunpack.i.h.bf16 %v4668_v9  ;;  %v4669_v21 = vunpack.i.l.bf16 %v4668_v9 }
 0x5ae   : > { %v4673_v11 = vpop.permute.xlu1 %4672  ;;  %v4082_v10 = vpack.c.bf16 %v4670_v0, %v4669_v21 }
 0x5af   : > { %v4675_v41 = vunpack.i.h.bf16 %v4673_v11  ;;  %v4674_v13 = vunpack.i.l.bf16 %v4673_v11  ;;  %v2809_v3 = vpop.permute.xlu0 %2808 }
 0x5b0   : > { %vm2893_vm1 = vcmp.eq.s32.totalorder %v2809_v3, %v5978_v14  ;;  %4084 = vmatprep.subr.msk.bf16.mxu0 %vm4083_vm15, %v4082_v10 }
 0x5b1   : > { %v4085_v1 = vpack.c.bf16 %v4675_v41, %v4674_v13  ;;  %vm4086_vm2 = vmpackc.low %vm2893_vm1, %vm2892_vm0 }
 0x5b2   : > { %v2863_v6 = vpop.permute.xlu1 %2862 }
 0x5b3   : > { %4087 = vmatpush3.bf16.msk.msra.mxu0 %vm4086_vm2, %v4085_v1  ;;  %v2860_v2 = vpop.permute.xlu0 %2859  ;;  %vm2911_vm4 = vcmp.eq.s32.totalorder %v2863_v6, %v5978_v14 }
 0x5b4   : > { %vm2910_vm3 = vcmp.eq.s32.totalorder %v2860_v2, %v5978_v14 }
 0x5b5   : > { %vm4089_vm5 = vmpackc.low %vm2911_vm4, %vm2910_vm3 }
 0x5b6   : > { %v2812_v12 = vpop.permute.xlu1 %2811 }
 0x5b7   : > { %v4678_v5 = vpop.permute.xlu0 %4677  ;;  %vm2894_vm6 = vcmp.eq.s32.totalorder %v2812_v12, %v5978_v14 }
 0x5b8   : > { %v4680_v9 = vunpack.i.h.bf16 %v4678_v5  ;;  %v4679_v4 = vunpack.i.l.bf16 %v4678_v5 }
 0x5ba   : > { %v4683_v7 = vpop.permute.xlu1 %4682  ;;  %v4088_v21 = vpack.c.bf16 %v4680_v9, %v4679_v4 }
 0x5bb   : > { %v4685_v11 = vunpack.i.h.bf16 %v4683_v7  ;;  %v4684_v0 = vunpack.i.l.bf16 %v4683_v7  ;;  %v2815_v8 = vpop.permute.xlu0 %2814 }
 0x5bc   : > { %vm2895_vm7 = vcmp.eq.s32.totalorder %v2815_v8, %v5978_v14  ;;  %4090 = vmatprep.subr.msk.bf16.mxu0 %vm4089_vm5, %v4088_v21 }
 0x5bd   : > { %v4091_v13 = vpack.c.bf16 %v4685_v11, %v4684_v0  ;;  %vm4092_vm8 = vmpackc.low %vm2895_vm7, %vm2894_vm6 }
 0x5be   : > { %v2869_v41 = vpop.permute.xlu1 %2868 }
 0x5bf   : > { %4093 = vmatpush3.bf16.msk.msra.mxu0 %vm4092_vm8, %v4091_v13  ;;  %v2866_v10 = vpop.permute.xlu0 %2865  ;;  %vm2913_vm10 = vcmp.eq.s32.totalorder %v2869_v41, %v5978_v14 }
 0x5c0   : > { %vm2912_vm9 = vcmp.eq.s32.totalorder %v2866_v10, %v5978_v14 }
 0x5c1   : > { %vm4095_vm11 = vmpackc.low %vm2913_vm10, %vm2912_vm9 }
 0x5c2   : > { %v2818_v3 = vpop.permute.xlu1 %2817 }
 0x5c3   : > { %v4688_v1 = vpop.permute.xlu0 %4687  ;;  %vm2896_vm12 = vcmp.eq.s32.totalorder %v2818_v3, %v5978_v14 }
 0x5c4   : > { %v4690_v5 = vunpack.i.h.bf16 %v4688_v1  ;;  %v4689_v6 = vunpack.i.l.bf16 %v4688_v1 }
 0x5c6   : > { %v4693_v2 = vpop.permute.xlu1 %4692  ;;  %v4094_v4 = vpack.c.bf16 %v4690_v5, %v4689_v6 }
 0x5c7   : > { %v4695_v7 = vunpack.i.h.bf16 %v4693_v2  ;;  %v4694_v9 = vunpack.i.l.bf16 %v4693_v2  ;;  %v2821_v12 = vpop.permute.xlu0 %2820 }
 0x5c8   : > { %vm2897_vm13 = vcmp.eq.s32.totalorder %v2821_v12, %v5978_v14  ;;  %4096 = vmatprep.subr.msk.bf16.mxu0 %vm4095_vm11, %v4094_v4 }
 0x5c9   : > { %v4097_v0 = vpack.c.bf16 %v4695_v7, %v4694_v9  ;;  %vm4098_vm14 = vmpackc.low %vm2897_vm13, %vm2896_vm12 }
 0x5ca   : > { %v2875_v11 = vpop.permute.xlu1 %2874 }
 0x5cb   : > { %4099 = vmatpush3.bf16.msk.msra.mxu0 %vm4098_vm14, %v4097_v0  ;;  %v2872_v21 = vpop.permute.xlu0 %2871  ;;  %vm2915_vm0 = vcmp.eq.s32.totalorder %v2875_v11, %v5978_v14 }
 0x5cc   : > { %vm2914_vm15 = vcmp.eq.s32.totalorder %v2872_v21, %v5978_v14 }
 0x5cd   : > { %vm4101_vm1 = vmpackc.low %vm2915_vm0, %vm2914_vm15 }
 0x5ce   : > { %v2824_v8 = vpop.permute.xlu1 %2823 }
 0x5cf   : > { %v4698_v13 = vpop.permute.xlu0 %4697  ;;  %vm2898_vm2 = vcmp.eq.s32.totalorder %v2824_v8, %v5978_v14 }
 0x5d0   : > { %v4700_v1 = vunpack.i.h.bf16 %v4698_v13  ;;  %v4699_v41 = vunpack.i.l.bf16 %v4698_v13 }
 0x5d2   : > { %v4703_v10 = vpop.permute.xlu1 %4702  ;;  %v4100_v6 = vpack.c.bf16 %v4700_v1, %v4699_v41 }
 0x5d3   : > { %v4705_v2 = vunpack.i.h.bf16 %v4703_v10  ;;  %v4704_v5 = vunpack.i.l.bf16 %v4703_v10  ;;  %v2827_v3 = vpop.permute.xlu0 %2826 }
 0x5d4   : > { %vm2899_vm3 = vcmp.eq.s32.totalorder %v2827_v3, %v5978_v14  ;;  %4102 = vmatprep.subr.msk.bf16.mxu0 %vm4101_vm1, %v4100_v6 }
 0x5d5   : > { %v4103_v9 = vpack.c.bf16 %v4705_v2, %v4704_v5  ;;  %vm4104_vm4 = vmpackc.low %vm2899_vm3, %vm2898_vm2 }
 0x5d6   : > { %v2881_v7 = vpop.permute.xlu1 %2880 }
 0x5d7   : > { %4105 = vmatpush3.bf16.msk.msra.mxu0 %vm4104_vm4, %v4103_v9  ;;  %v2878_v4 = vpop.permute.xlu0 %2877  ;;  %vm2917_vm6 = vcmp.eq.s32.totalorder %v2881_v7, %v5978_v14 }
 0x5d8   : > { %vm2916_vm5 = vcmp.eq.s32.totalorder %v2878_v4, %v5978_v14 }
 0x5d9   : > { %vm4107_vm7 = vmpackc.low %vm2917_vm6, %vm2916_vm5 }
 0x5da   : > { %v2830_v12 = vpop.permute.xlu1 %2829 }
 0x5db   : > { %v4708_v0 = vpop.permute.xlu0 %4707  ;;  %vm2900_vm8 = vcmp.eq.s32.totalorder %v2830_v12, %v5978_v14 }
 0x5dc   : > { %v4710_v13 = vunpack.i.h.bf16 %v4708_v0  ;;  %v4709_v11 = vunpack.i.l.bf16 %v4708_v0 }
 0x5de   : > { %v4713_v21 = vpop.permute.xlu1 %4712  ;;  %v4106_v41 = vpack.c.bf16 %v4710_v13, %v4709_v11 }
 0x5df   : > { %v4715_v10 = vunpack.i.h.bf16 %v4713_v21  ;;  %v4714_v1 = vunpack.i.l.bf16 %v4713_v21  ;;  %v2833_v8 = vpop.permute.xlu0 %2832 }
 0x5e0   : > { %vm2901_vm9 = vcmp.eq.s32.totalorder %v2833_v8, %v5978_v14  ;;  %4108 = vmatprep.subr.msk.bf16.mxu0 %vm4107_vm7, %v4106_v41  ;;  %v3187_v8 = vld [vmem:[%s3186_s12] sm:$0x7] }
 0x5e1   : > { %v4109_v5 = vpack.c.bf16 %v4715_v10, %v4714_v1  ;;  %vm4110_vm10 = vmpackc.low %vm2901_vm9, %vm2900_vm8 }
 0x5e2   : > { %v2887_v2 = vpop.permute.xlu1 %2886 }
 0x5e3   : > { %4111 = vmatpush3.bf16.msk.msra.mxu0 %vm4110_vm10, %v4109_v5  ;;  %v2884_v6 = vpop.permute.xlu0 %2883  ;;  %vm2919_vm12 = vcmp.eq.s32.totalorder %v2887_v2, %v5978_v14 }
 0x5e4   : > { %vm2918_vm11 = vcmp.eq.s32.totalorder %v2884_v6, %v5978_v14 }
 0x5e5   : > { %vm4113_vm13 = vmpackc.low %vm2919_vm12, %vm2918_vm11 }
 0x5e6   : > { %v2836_v3 = vpop.permute.xlu1 %2835 }
 0x5e7   : > { %v4718_v9 = vpop.permute.xlu0 %4717  ;;  %vm2902_vm14 = vcmp.eq.s32.totalorder %v2836_v3, %v5978_v14 }
 0x5e8   : > { %v4720_v7 = vunpack.i.h.bf16 %v4718_v9  ;;  %v4719_v0 = vunpack.i.l.bf16 %v4718_v9 }
 0x5ea   : > { %v4723_v4 = vpop.permute.xlu1 %4722  ;;  %v4112_v12 = vpack.c.bf16 %v4720_v7, %v4719_v0 }
 0x5eb   : > { %v4725_v21 = vunpack.i.h.bf16 %v4723_v4  ;;  %v4724_v13 = vunpack.i.l.bf16 %v4723_v4  ;;  %v2839_v11 = vpop.permute.xlu0 %2838 }
 0x5ec   : > { %vm2903_vm15 = vcmp.eq.s32.totalorder %v2839_v11, %v5978_v14  ;;  %4114 = vmatprep.subr.msk.bf16.mxu0 %vm4113_vm13, %v4112_v12 }
 0x5ed   : > { %v4115_v10 = vpack.c.bf16 %v4725_v21, %v4724_v13  ;;  %vm4116_vm0 = vmpackc.low %vm2903_vm15, %vm2902_vm14 }
 0x5ef   : > { %4117 = vmatpush3.bf16.msk.msra.mxu0 %vm4116_vm0, %v4115_v10 }
 0x5f2   : > { %3180 = vmatmul.mubr.f32.vlgmr.msra.gmra.mrb[0].mxu0 %v5977_v36 }
 0x6c5   : > { %v3747_v1 = vpop.f32.mrb[0].mxu0  ;;  %2757 = sbr.rel (!%p2754_p1) target bundleno = 1292 (0x50c), region = 55 }
 0x6c6   : > { %v3748_v41 = vpop.f32.mrb[1].mxu0 }
 0x6c7   : > { %v3749_v2 = vadd.f32 %v3748_v41, %v3747_v1 }
 0x6c9   : > { %v3188_v5 = vadd.f32 %v3749_v2, %v3187_v8 }
 0x6cb   : > { %3189 = vst [vmem:[%s3186_s12] sm:$0x7] %v3188_v5 }
 0x6cc PF:  {}

</bundles_post_ra>
